<compile_context>
chip_gen: v6e
topology: v6e:2x2x1
jax: 0.10.0
libtpu: 0.0.40
codegen_flags: <defaults>
</compile_context>

<pallas_src>
import functools

import jax
import jax.numpy as jnp
import numpy as np
from jax.experimental import pallas as pl
from jax.experimental.pallas import tpu as pltpu

# ------------------------- configuration (matches __init__ args) -------------------------
FEATURES_SIZE = 16          # features_size
MAX_HIDDEN = 6              # max_num_hidden_layers
Q = 32                      # qtd_neuron_per_hidden_layer
N_CLASSES = 4               # n_classes
AUX_LAYER = 3               # aux_layer (1-indexed)
A = 64                      # n_neuron_aux_layer
N_AUX_FEAT = 3              # n_aux_feat
DROPOUT_P = 0.5             # dropout_p

PAD_C = 128                 # output head padded to one full lane tile
NEG_INF = -1.0e30           # bias for pad columns -> exp() == 0
BLOCK_B = 128               # samples per grid step (multiple of 8 sublanes)


# ----------------------------------- Pallas kernel ---------------------------------------
def auxdrop_ogd_kernel(x_ref, aux_ref, w0_ref, w2a_ref, w2h_ref, w3_ref,
                       wslab_ref, pslab_ref, out_ref, *, scale):
    f32 = jnp.float32
    relu = lambda z: jnp.maximum(z, 0.0)
    dot = lambda a, b: jnp.dot(a, b, preferred_element_type=f32)

    x = x_ref[...]                       # (B, F)
    aux = aux_ref[...]                   # (B, n_aux_feat)
    ws = wslab_ref[...]                  # (Q, PAD_C + 3*Q): [wout_pad | w1 | w4 | w5]
    ps = pslab_ref[...]                  # (8, 128): biases + aux mask

    w_out = ws[:, 0:PAD_C]
    w1 = ws[:, PAD_C:PAD_C + Q]
    w4 = ws[:, PAD_C + Q:PAD_C + 2 * Q]
    w5 = ws[:, PAD_C + 2 * Q:PAD_C + 3 * Q]

    b0 = ps[0:1, 0:Q]
    b1 = ps[1:2, 0:Q]
    b2 = ps[2:3, 0:A]
    b3 = ps[3:4, 0:Q]
    b4 = ps[4:5, 0:Q]
    b5 = ps[5:6, 0:Q]
    bout = ps[6:7, :]                    # (1, PAD_C); pad lanes hold NEG_INF
    mask = ps[7:8, 0:A]                  # AuxDrop mask (aux_mask ++ binomial sample)

    # hidden layer 0
    h0 = relu(dot(x, w0_ref[...]) + b0)
    # hidden layer 1
    h1 = relu(dot(h0, w1) + b1)
    # hidden layer 2 (aux layer): cat(aux, h1) @ W == aux @ W[:naux] + h1 @ W[naux:]
    h2 = relu(dot(aux, w2a_ref[...]) + dot(h1, w2h_ref[...]) + b2) * mask * scale
    # hidden layers 3..5
    h3 = relu(dot(h2, w3_ref[...]) + b3)
    h4 = relu(dot(h3, w4) + b4)
    h5 = relu(dot(h4, w5) + b5)

    # output head: softmax over padded 128-lane logits (pad columns -> exp == 0).
    # Exact division for the normalization so each row sums to 1.0 to f32 rounding.
    logits = dot(h5, w_out) + bout
    z = logits - jnp.max(logits, axis=-1, keepdims=True)
    e = jnp.exp(z)
    out_ref[...] = e / jnp.sum(e, axis=-1, keepdims=True)


# ------------------------------------- wrapper -------------------------------------------
def pack_params(p):
    """Pack weights/biases into two slabs (reduces per-call DMA count)."""
    wout_pad = jnp.zeros((Q, PAD_C), jnp.float32).at[:, :N_CLASSES].set(p["wout"])
    wslab = jnp.concatenate([wout_pad, p["w1"], p["w4"], p["w5"]], axis=1)

    pslab = jnp.zeros((8, 128), jnp.float32)
    pslab = pslab.at[0, :Q].set(p["b0"][0])
    pslab = pslab.at[1, :Q].set(p["b1"][0])
    pslab = pslab.at[2, :A].set(p["b2"][0])
    pslab = pslab.at[3, :Q].set(p["b3"][0])
    pslab = pslab.at[4, :Q].set(p["b4"][0])
    pslab = pslab.at[5, :Q].set(p["b5"][0])
    pslab = pslab.at[6, :].set(NEG_INF)
    pslab = pslab.at[6, :N_CLASSES].set(p["bout"][0])
    # row 7 (aux mask) is filled per forward call.
    return wslab, pslab


@functools.partial(jax.jit, static_argnames=("block_b",))
def auxdrop_forward(x, aux_feat, params, mask, block_b=BLOCK_B):
    n = x.shape[0]
    n_pad = (-n) % block_b
    if n_pad:
        x = jnp.pad(x, ((0, n_pad), (0, 0)))
        aux_feat = jnp.pad(aux_feat, ((0, n_pad), (0, 0)))
    n_tot = n + n_pad

    wslab, pslab = pack_params(params)
    pslab = pslab.at[7, :A].set(mask[0])

    kernel = functools.partial(auxdrop_ogd_kernel, scale=1.0 / (1.0 - DROPOUT_P))
    const = lambda i: (0, 0)          # params resident across grid steps

    out = pl.pallas_call(
        kernel,
        out_shape=jax.ShapeDtypeStruct((n_tot, PAD_C), jnp.float32),
        grid=(n_tot // block_b,),
        in_specs=[
            pl.BlockSpec((block_b, FEATURES_SIZE), lambda i: (i, 0)),   # x block
            pl.BlockSpec((block_b, N_AUX_FEAT), lambda i: (i, 0)),      # aux block
            pl.BlockSpec((FEATURES_SIZE, Q), const),                    # w0
            pl.BlockSpec((N_AUX_FEAT, A), const),                       # w2 (aux part)
            pl.BlockSpec((Q, A), const),                                # w2 (hidden part)
            pl.BlockSpec((A, Q), const),                                # w3
            pl.BlockSpec((Q, PAD_C + 3 * Q), const),                    # wout|w1|w4|w5 slab
            pl.BlockSpec((8, 128), const),                              # bias + mask slab
        ],
        out_specs=pl.BlockSpec((block_b, PAD_C), lambda i: (i, 0)),
        compiler_params=pltpu.CompilerParams(
            dimension_semantics=("parallel",),
        ),
    )(x, aux_feat, params["w0"], params["w2a"], params["w2h"], params["w3"],
      wslab, pslab)

    return out[:n, :N_CLASSES]


# --------------------------- deterministic param / mask setup ----------------------------
def init_params(key):
    def linear(key, fan_in, fan_out):
        kw, kb = jax.random.split(key)
        bound = 1.0 / np.sqrt(fan_in)
        w = jax.random.uniform(kw, (fan_in, fan_out), jnp.float32, -bound, bound)
        b = jax.random.uniform(kb, (1, fan_out), jnp.float32, -bound, bound)
        return w, b

    keys = jax.random.split(key, 7)
    p = {}
    p["w0"], p["b0"] = linear(keys[0], FEATURES_SIZE, Q)
    p["w1"], p["b1"] = linear(keys[1], Q, Q)
    w2, p["b2"] = linear(keys[2], N_AUX_FEAT + Q, A)     # aux layer Linear(naux+Q, A)
    p["w2a"] = w2[:N_AUX_FEAT, :]
    p["w2h"] = w2[N_AUX_FEAT:, :]
    p["w3"], p["b3"] = linear(keys[3], A, Q)
    p["w4"], p["b4"] = linear(keys[4], Q, Q)
    p["w5"], p["b5"] = linear(keys[5], Q, Q)
    p["wout"], p["bout"] = linear(keys[6], Q, N_CLASSES)
    return p


def make_aux_mask(key, aux_feat_mask):
    """Replicates forward()'s Binomial sample for the non-aux neurons of the aux layer."""
    aux_p = (DROPOUT_P * A - (N_AUX_FEAT - jnp.sum(aux_feat_mask))) / (A - N_AUX_FEAT)
    aux_p = jnp.clip(aux_p, 0.0, 1.0)   # guard against degenerate aux_mask values
    non_aux = jax.random.bernoulli(key, 1.0 - aux_p, (1, A - N_AUX_FEAT)).astype(jnp.float32)
    return jnp.concatenate([aux_feat_mask, non_aux], axis=1)


# ----------------------------- pure-JAX reference (for checking) -------------------------
def reference_forward(x, aux, p, mask):
    relu = lambda z: jnp.maximum(z, 0.0)
    scale = 1.0 / (1.0 - DROPOUT_P)
    h0 = relu(x @ p["w0"] + p["b0"])
    h1 = relu(h0 @ p["w1"] + p["b1"])
    h2 = relu(aux @ p["w2a"] + h1 @ p["w2h"] + p["b2"]) * mask * scale
    h3 = relu(h2 @ p["w3"] + p["b3"])
    h4 = relu(h3 @ p["w4"] + p["b4"])
    h5 = relu(h4 @ p["w5"] + p["b5"])
    return jax.nn.softmax(h5 @ p["wout"] + p["bout"], axis=1)


# TODO(synk): partial_fit (SGD step + CrossEntropyLoss backward) is training-side and not
# part of this forward kernel.

if __name__ == "__main__":
    root = jax.random.PRNGKey(0)
    k_param, k_x, k_aux, k_amask, k_drop = jax.random.split(root, 5)

    N = 256                                   # 2 grid steps of BLOCK_B=128 samples
    params = init_params(k_param)
    x = jax.random.normal(k_x, (N, FEATURES_SIZE), jnp.float32)
    aux_feat = jax.random.normal(k_aux, (N, N_AUX_FEAT), jnp.float32)
    aux_mask = jax.random.bernoulli(k_amask, 0.7, (1, N_AUX_FEAT)).astype(jnp.float32)
    mask = make_aux_mask(k_drop, aux_mask)

    out = auxdrop_forward(x, aux_feat, params, mask)
    out = jax.block_until_ready(out)

    ref = reference_forward(x, aux_feat, params, mask)
    np.testing.assert_allclose(np.asarray(out), np.asarray(ref), rtol=5e-3, atol=2e-3)
    # exact-division softmax inside the kernel -> rows sum to 1 within f32 rounding
    np.testing.assert_allclose(np.asarray(out).sum(axis=1), np.ones(N), rtol=0, atol=1e-4)

    assert out.shape == (N, N_CLASSES)
    print("KERNEL_OK")
</pallas_src>

<mosaic_0001>
module attributes {stable_mosaic.version = 11 : i64} {
  func.func @auxdrop_ogd_kernel(%arg0: i32, %arg1: memref<128x16xf32, #tpu.memory_space<vmem>>, %arg2: memref<128x3xf32, #tpu.memory_space<vmem>>, %arg3: memref<16x32xf32, #tpu.memory_space<vmem>>, %arg4: memref<3x64xf32, #tpu.memory_space<vmem>>, %arg5: memref<32x64xf32, #tpu.memory_space<vmem>>, %arg6: memref<64x32xf32, #tpu.memory_space<vmem>>, %arg7: memref<32x224xf32, #tpu.memory_space<vmem>>, %arg8: memref<8x128xf32, #tpu.memory_space<vmem>>, %arg9: memref<128x128xf32, #tpu.memory_space<vmem>>) attributes {dimension_semantics = [#tpu.dimension_semantics<parallel>], iteration_bounds = array<i64: 2>, scalar_prefetch = 0 : i64, scratch_operands = 0 : i64, tpu.core_type = #tpu.core_type<tc>, window_params = [{transform_indices = @transform_0, window_bounds = array<i64: 128, 16>}, {transform_indices = @transform_1, window_bounds = array<i64: 128, 3>}, {pipeline_mode = #tpu.pipeline_mode<synchronous>, transform_indices = @transform_2, window_bounds = array<i64: 16, 32>}, {pipeline_mode = #tpu.pipeline_mode<synchronous>, transform_indices = @transform_3, window_bounds = array<i64: 3, 64>}, {pipeline_mode = #tpu.pipeline_mode<synchronous>, transform_indices = @transform_4, window_bounds = array<i64: 32, 64>}, {pipeline_mode = #tpu.pipeline_mode<synchronous>, transform_indices = @transform_5, window_bounds = array<i64: 64, 32>}, {pipeline_mode = #tpu.pipeline_mode<synchronous>, transform_indices = @transform_6, window_bounds = array<i64: 32, 224>}, {pipeline_mode = #tpu.pipeline_mode<synchronous>, transform_indices = @transform_7, window_bounds = array<i64: 8, 128>}, {transform_indices = @transform_8, window_bounds = array<i64: 128, 128>}]} {
    %c0 = arith.constant 0 : index
    %c0_0 = arith.constant 0 : index
    %0 = vector.load %arg1[%c0, %c0_0] : memref<128x16xf32, #tpu.memory_space<vmem>>, vector<128x16xf32>
    %c0_1 = arith.constant 0 : index
    %c0_2 = arith.constant 0 : index
    %1 = vector.load %arg2[%c0_1, %c0_2] : memref<128x3xf32, #tpu.memory_space<vmem>>, vector<128x3xf32>
    %c0_3 = arith.constant 0 : index
    %c0_4 = arith.constant 0 : index
    %2 = vector.load %arg7[%c0_3, %c0_4] : memref<32x224xf32, #tpu.memory_space<vmem>>, vector<32x224xf32>
    %c0_5 = arith.constant 0 : index
    %c0_6 = arith.constant 0 : index
    %3 = vector.load %arg8[%c0_5, %c0_6] : memref<8x128xf32, #tpu.memory_space<vmem>>, vector<8x128xf32>
    %4 = vector.extract_strided_slice %2 {offsets = [0, 0], sizes = [32, 128], strides = [1, 1]} : vector<32x224xf32> to vector<32x128xf32>
    %5 = vector.extract_strided_slice %2 {offsets = [0, 128], sizes = [32, 32], strides = [1, 1]} : vector<32x224xf32> to vector<32x32xf32>
    %6 = vector.extract_strided_slice %2 {offsets = [0, 160], sizes = [32, 32], strides = [1, 1]} : vector<32x224xf32> to vector<32x32xf32>
    %7 = vector.extract_strided_slice %2 {offsets = [0, 192], sizes = [32, 32], strides = [1, 1]} : vector<32x224xf32> to vector<32x32xf32>
    %8 = vector.extract_strided_slice %3 {offsets = [0, 0], sizes = [1, 32], strides = [1, 1]} : vector<8x128xf32> to vector<1x32xf32>
    %9 = vector.extract_strided_slice %3 {offsets = [1, 0], sizes = [1, 32], strides = [1, 1]} : vector<8x128xf32> to vector<1x32xf32>
    %10 = vector.extract_strided_slice %3 {offsets = [2, 0], sizes = [1, 64], strides = [1, 1]} : vector<8x128xf32> to vector<1x64xf32>
    %11 = vector.extract_strided_slice %3 {offsets = [3, 0], sizes = [1, 32], strides = [1, 1]} : vector<8x128xf32> to vector<1x32xf32>
    %12 = vector.extract_strided_slice %3 {offsets = [4, 0], sizes = [1, 32], strides = [1, 1]} : vector<8x128xf32> to vector<1x32xf32>
    %13 = vector.extract_strided_slice %3 {offsets = [5, 0], sizes = [1, 32], strides = [1, 1]} : vector<8x128xf32> to vector<1x32xf32>
    %14 = vector.extract_strided_slice %3 {offsets = [6, 0], sizes = [1, 128], strides = [1, 1]} : vector<8x128xf32> to vector<1x128xf32>
    %15 = vector.extract_strided_slice %3 {offsets = [7, 0], sizes = [1, 64], strides = [1, 1]} : vector<8x128xf32> to vector<1x64xf32>
    %c0_7 = arith.constant 0 : index
    %c0_8 = arith.constant 0 : index
    %16 = vector.load %arg3[%c0_7, %c0_8] : memref<16x32xf32, #tpu.memory_space<vmem>>, vector<16x32xf32>
    %cst = arith.constant dense<0.000000e+00> : vector<128x32xf32>
    %17 = tpu.matmul %0, %16, %cst {dimension_numbers = #tpu.dot_dimension_numbers<[1], [0], [0], [1], [0, 0, 1, 1], [], []>} : vector<128x16xf32>, vector<16x32xf32>, vector<128x32xf32> -> vector<128x32xf32>
    %18 = vector.broadcast %8 : vector<1x32xf32> to vector<128x32xf32>
    %19 = arith.addf %17, %18 : vector<128x32xf32>
    %cst_9 = arith.constant 0.000000e+00 : f32
    %20 = vector.broadcast %cst_9 : f32 to vector<128x32xf32>
    %21 = arith.maximumf %19, %20 : vector<128x32xf32>
    %cst_10 = arith.constant dense<0.000000e+00> : vector<128x32xf32>
    %22 = tpu.matmul %21, %5, %cst_10 {dimension_numbers = #tpu.dot_dimension_numbers<[1], [0], [0], [1], [0, 0, 1, 1], [], []>} : vector<128x32xf32>, vector<32x32xf32>, vector<128x32xf32> -> vector<128x32xf32>
    %23 = vector.broadcast %9 : vector<1x32xf32> to vector<128x32xf32>
    %24 = arith.addf %22, %23 : vector<128x32xf32>
    %cst_11 = arith.constant 0.000000e+00 : f32
    %25 = vector.broadcast %cst_11 : f32 to vector<128x32xf32>
    %26 = arith.maximumf %24, %25 : vector<128x32xf32>
    %c0_12 = arith.constant 0 : index
    %c0_13 = arith.constant 0 : index
    %27 = vector.load %arg4[%c0_12, %c0_13] : memref<3x64xf32, #tpu.memory_space<vmem>>, vector<3x64xf32>
    %cst_14 = arith.constant dense<0.000000e+00> : vector<128x64xf32>
    %28 = tpu.matmul %1, %27, %cst_14 {dimension_numbers = #tpu.dot_dimension_numbers<[1], [0], [0], [1], [0, 0, 1, 1], [], []>} : vector<128x3xf32>, vector<3x64xf32>, vector<128x64xf32> -> vector<128x64xf32>
    %c0_15 = arith.constant 0 : index
    %c0_16 = arith.constant 0 : index
    %29 = vector.load %arg5[%c0_15, %c0_16] : memref<32x64xf32, #tpu.memory_space<vmem>>, vector<32x64xf32>
    %cst_17 = arith.constant dense<0.000000e+00> : vector<128x64xf32>
    %30 = tpu.matmul %26, %29, %cst_17 {dimension_numbers = #tpu.dot_dimension_numbers<[1], [0], [0], [1], [0, 0, 1, 1], [], []>} : vector<128x32xf32>, vector<32x64xf32>, vector<128x64xf32> -> vector<128x64xf32>
    %31 = arith.addf %28, %30 : vector<128x64xf32>
    %32 = vector.broadcast %10 : vector<1x64xf32> to vector<128x64xf32>
    %33 = arith.addf %31, %32 : vector<128x64xf32>
    %cst_18 = arith.constant 0.000000e+00 : f32
    %34 = vector.broadcast %cst_18 : f32 to vector<128x64xf32>
    %35 = arith.maximumf %33, %34 : vector<128x64xf32>
    %36 = vector.broadcast %15 : vector<1x64xf32> to vector<128x64xf32>
    %37 = arith.mulf %35, %36 : vector<128x64xf32>
    %cst_19 = arith.constant 2.000000e+00 : f32
    %38 = vector.broadcast %cst_19 : f32 to vector<128x64xf32>
    %39 = arith.mulf %37, %38 : vector<128x64xf32>
    %c0_20 = arith.constant 0 : index
    %c0_21 = arith.constant 0 : index
    %40 = vector.load %arg6[%c0_20, %c0_21] : memref<64x32xf32, #tpu.memory_space<vmem>>, vector<64x32xf32>
    %cst_22 = arith.constant dense<0.000000e+00> : vector<128x32xf32>
    %41 = tpu.matmul %39, %40, %cst_22 {dimension_numbers = #tpu.dot_dimension_numbers<[1], [0], [0], [1], [0, 0, 1, 1], [], []>} : vector<128x64xf32>, vector<64x32xf32>, vector<128x32xf32> -> vector<128x32xf32>
    %42 = vector.broadcast %11 : vector<1x32xf32> to vector<128x32xf32>
    %43 = arith.addf %41, %42 : vector<128x32xf32>
    %cst_23 = arith.constant 0.000000e+00 : f32
    %44 = vector.broadcast %cst_23 : f32 to vector<128x32xf32>
    %45 = arith.maximumf %43, %44 : vector<128x32xf32>
    %cst_24 = arith.constant dense<0.000000e+00> : vector<128x32xf32>
    %46 = tpu.matmul %45, %6, %cst_24 {dimension_numbers = #tpu.dot_dimension_numbers<[1], [0], [0], [1], [0, 0, 1, 1], [], []>} : vector<128x32xf32>, vector<32x32xf32>, vector<128x32xf32> -> vector<128x32xf32>
    %47 = vector.broadcast %12 : vector<1x32xf32> to vector<128x32xf32>
    %48 = arith.addf %46, %47 : vector<128x32xf32>
    %cst_25 = arith.constant 0.000000e+00 : f32
    %49 = vector.broadcast %cst_25 : f32 to vector<128x32xf32>
    %50 = arith.maximumf %48, %49 : vector<128x32xf32>
    %cst_26 = arith.constant dense<0.000000e+00> : vector<128x32xf32>
    %51 = tpu.matmul %50, %7, %cst_26 {dimension_numbers = #tpu.dot_dimension_numbers<[1], [0], [0], [1], [0, 0, 1, 1], [], []>} : vector<128x32xf32>, vector<32x32xf32>, vector<128x32xf32> -> vector<128x32xf32>
    %52 = vector.broadcast %13 : vector<1x32xf32> to vector<128x32xf32>
    %53 = arith.addf %51, %52 : vector<128x32xf32>
    %cst_27 = arith.constant 0.000000e+00 : f32
    %54 = vector.broadcast %cst_27 : f32 to vector<128x32xf32>
    %55 = arith.maximumf %53, %54 : vector<128x32xf32>
    %cst_28 = arith.constant dense<0.000000e+00> : vector<128x128xf32>
    %56 = tpu.matmul %55, %4, %cst_28 {dimension_numbers = #tpu.dot_dimension_numbers<[1], [0], [0], [1], [0, 0, 1, 1], [], []>} : vector<128x32xf32>, vector<32x128xf32>, vector<128x128xf32> -> vector<128x128xf32>
    %57 = vector.broadcast %14 : vector<1x128xf32> to vector<128x128xf32>
    %58 = arith.addf %56, %57 : vector<128x128xf32>
    %cst_29 = arith.constant dense<0xFF800000> : vector<128xf32>
    %59 = vector.multi_reduction <maximumf>, %58, %cst_29 [1] : vector<128x128xf32> to vector<128xf32>
    %60 = vector.shape_cast %59 : vector<128xf32> to vector<128x1xf32>
    %61 = vector.broadcast %60 : vector<128x1xf32> to vector<128x128xf32>
    %62 = arith.subf %58, %61 : vector<128x128xf32>
    %63 = math.exp %62 : vector<128x128xf32>
    %cst_30 = arith.constant dense<0.000000e+00> : vector<128xf32>
    %64 = vector.multi_reduction <add>, %63, %cst_30 [1] : vector<128x128xf32> to vector<128xf32>
    %65 = vector.shape_cast %64 : vector<128xf32> to vector<128x1xf32>
    %66 = vector.broadcast %65 : vector<128x1xf32> to vector<128x128xf32>
    %67 = arith.divf %63, %66 : vector<128x128xf32>
    %c0_31 = arith.constant 0 : index
    %c0_32 = arith.constant 0 : index
    %68 = vector.load %arg9[%c0_31, %c0_32] : memref<128x128xf32, #tpu.memory_space<vmem>>, vector<128x128xf32>
    tpu.vector_store %arg9[%c0_31, %c0_32], %67 {strides = array<i32>} : memref<128x128xf32, #tpu.memory_space<vmem>>, vector<128x128xf32>,
    return
  }
  func.func @transform_0(%arg0: i32) -> (i32, i32) {
    %c0_i32 = arith.constant 0 : i32
    %c0_i32_0 = arith.constant 0 : i32
    return %arg0, %c0_i32 : i32, i32
  }
  func.func @transform_1(%arg0: i32) -> (i32, i32) {
    %c0_i32 = arith.constant 0 : i32
    %c0_i32_0 = arith.constant 0 : i32
    return %arg0, %c0_i32 : i32, i32
  }
  func.func @transform_2(%arg0: i32) -> (i32, i32) {
    %c0_i32 = arith.constant 0 : i32
    %c0_i32_0 = arith.constant 0 : i32
    %c0_i32_1 = arith.constant 0 : i32
    return %c0_i32, %c0_i32_0 : i32, i32
  }
  func.func @transform_3(%arg0: i32) -> (i32, i32) {
    %c0_i32 = arith.constant 0 : i32
    %c0_i32_0 = arith.constant 0 : i32
    %c0_i32_1 = arith.constant 0 : i32
    return %c0_i32, %c0_i32_0 : i32, i32
  }
  func.func @transform_4(%arg0: i32) -> (i32, i32) {
    %c0_i32 = arith.constant 0 : i32
    %c0_i32_0 = arith.constant 0 : i32
    %c0_i32_1 = arith.constant 0 : i32
    return %c0_i32, %c0_i32_0 : i32, i32
  }
  func.func @transform_5(%arg0: i32) -> (i32, i32) {
    %c0_i32 = arith.constant 0 : i32
    %c0_i32_0 = arith.constant 0 : i32
    %c0_i32_1 = arith.constant 0 : i32
    return %c0_i32, %c0_i32_0 : i32, i32
  }
  func.func @transform_6(%arg0: i32) -> (i32, i32) {
    %c0_i32 = arith.constant 0 : i32
    %c0_i32_0 = arith.constant 0 : i32
    %c0_i32_1 = arith.constant 0 : i32
    return %c0_i32, %c0_i32_0 : i32, i32
  }
  func.func @transform_7(%arg0: i32) -> (i32, i32) {
    %c0_i32 = arith.constant 0 : i32
    %c0_i32_0 = arith.constant 0 : i32
    %c0_i32_1 = arith.constant 0 : i32
    return %c0_i32, %c0_i32_0 : i32, i32
  }
  func.func @transform_8(%arg0: i32) -> (i32, i32) {
    %c0_i32 = arith.constant 0 : i32
    %c0_i32_0 = arith.constant 0 : i32
    return %arg0, %c0_i32 : i32, i32
  }
}

</mosaic_0001>

<bundles_post_ra>
// kernel: auxdrop_forward.1
= control target key start
LH: loop header
LB: loop body
LE: loop exit
PB: predicated region body
PF: predicated region fallthrough
CT: control target
= control target key end

     0   :  { %s3056_s27 = smov 0   ;;  %s3551_s0 = inlined_call_operand.vmem [shape: f32[256,16], index: 0, kind: input, shape index: {}]   ;;  %s3552_s1 = inlined_call_operand.vmem [shape: f32[256,3], index: 1, kind: input, shape index: {}]   ;;  %s3553_s2 = inlined_call_operand.vmem [shape: f32[16,32], index: 2, kind: input, shape index: {}]   ;;  %s3554_s3 = inlined_call_operand.vmem [shape: f32[3,64], index: 3, kind: input, shape index: {}]   ;;  %s3555_s4 = inlined_call_operand.vmem [shape: f32[32,64], index: 4, kind: input, shape index: {}]   ;;  %s3556_s5 = inlined_call_operand.vmem [shape: f32[64,32], index: 5, kind: input, shape index: {}]   ;;  %s3557_s6 = inlined_call_operand.vmem [shape: f32[32,224], index: 6, kind: input, shape index: {}]   ;;  %s3558_s7 = inlined_call_operand.vmem [shape: f32[8,128], index: 7, kind: input, shape index: {}]   ;;  %s3559_s8 = inlined_call_operand.vmem [shape: f32[256,128], index: 8, kind: output, shape index: {}]  }
   0x1 LB: > { %s2371_s28 = sadd.s32 4294967295, %s3007_s27   ;;  %p2375_p0 = scmp.ge.s32.totalorder %s3007_s27, 1  ;;  %s3007_s27 = sphi %s3056_s27, %s18_s27  }
   0x2   : > { %p274_p1 = scmp.lt.s32.totalorder %s3007_s27, 3 }
   0x4   : > { %p275_p2 = pnand %p2375_p0, %p274_p1 }
   0x5   : > { %s2376_s11 = sshll.u32 (!%p275_p2), %s2371_s28, 4  ;;  %s3010_s16 = smov (!%p275_p2), 64  }
   0x6   : > { %278 = sbr.rel (%p275_p2) target bundleno = 1763 (0x6e3), region = 52  ;;  %p314_p3 = scmp.lt.s32.totalorder (!%p275_p2), %s2376_s11, 31 }
   0xb   : > { %v373_v0 = vld [vmem:[%s3553_s2 + $0x8] sm:$0xff]  ;;  %v372_v1 = vld [vmem:[%s3553_s2] sm:$0xff]  ;;  %s3561_s11 = smov (!%p314_p3, %s2376_s11), 31  ;;  %vm378_vm0 = vcmask 130048   ;;  %v3113_v18 = vld [vmem:[%s3557_s6 + $0x38] sm:$0xff]  ;;  %vm1049_vm1 = vcmask 1042432   ;;  %v374_v27 = vlaneseq }
   0xc   : > { %2672 = vmatprep.subr.mxu0 %v373_v0  ;;  %s3070_s12 = sshll.u32 %s3561_s11, 3  ;;  %2700 = vmatprep.subr.mxu1 %v3113_v18  ;;  %v3120_v19 = vld [vmem:[%s3557_s6 + $0x28] sm:$0xff]  ;;  %v3127_v20 = vld [vmem:[%s3557_s6 + $0x18] sm:$0xff]  ;;  %v802_v23 = vld [vmem:[%s3554_s3] sm:$0x7]  ;;  %vm592_vm2 = vcmask 261120  }
   0xd   : > { %2673 = vmatpush3.msra.mxu0 %v373_v0  ;;  %s3076_s15 = scalar_lea.vmem %s3551_s0, %s3070_s12  ;;  %2701 = vmatpush3.msra.mxu1 %v3113_v18  ;;  %v3134_v21 = vld [vmem:[%s3557_s6 + $0x8] sm:$0xff]  ;;  %v806_v22 = vld [vmem:[%s3555_s4 + $0x18] sm:$0xff]  ;;  %v805_v24 = vld [vmem:[%s3555_s4 + $0x10] sm:$0xff]  ;;  %v3154_v28 = vshrl.u32 %v374_v27, 7  ;;  %s3184_s18 = scalar_lea.vmem %s3552_s1, %s3070_s12  ;;  %vm1000_vm3 = vcmask 23552   ;;  %vm1282_vm4 = vcmask 523264  }
   0xe   : > { %2674 = vmatprep.subr.mxu0 %v372_v1  ;;  %v331_v2 = vld [vmem:[%s3076_s15] sm:$0xff]  ;;  %v332_v3 = vld [vmem:[%s3076_s15 + $0x8] sm:$0xff]  ;;  %v333_v4 = vld [vmem:[%s3076_s15 + $0x10] sm:$0xff]  ;;  %2702 = vmatprep.subr.mxu1 %v3120_v19  ;;  %s3514_s30 = scalar_lea.vmem %s3559_s8, %s3070_s12 }
   0xf   : > { %2675 = vmatpush3.msra.mxu0 %v372_v1  ;;  %2676 = vmatprep.mubr.msk.f32.mxu0 %vm378_vm0, %v331_v2  ;;  %v334_v5 = vld [vmem:[%s3076_s15 + $0x18] sm:$0xff]  ;;  %v335_v6 = vld [vmem:[%s3076_s15 + $0x20] sm:$0xff]  ;;  %v336_v7 = vld [vmem:[%s3076_s15 + $0x28] sm:$0xff]  ;;  %v376_v29 = vsub.s32 0, %v3154_v28 }
  0x10   : > { %2677 = vmatmul.mubr.msk.f32.vlgmr.msra.gmra.mxu0 %vm378_vm0, %v332_v3  ;;  %v337_v8 = vld [vmem:[%s3076_s15 + $0x30] sm:$0xff]  ;;  %v338_v9 = vld [vmem:[%s3076_s15 + $0x38] sm:$0xff]  ;;  %v339_v10 = vld [vmem:[%s3076_s15 + $0x40] sm:$0xff]  ;;  %2703 = vmatpush3.msra.mxu1 %v3120_v19 }
  0x11   : > { %2679 = vmatprep.mubr.msk.f32.mxu0 %vm378_vm0, %v333_v4  ;;  %v340_v11 = vld [vmem:[%s3076_s15 + $0x48] sm:$0xff]  ;;  %v341_v12 = vld [vmem:[%s3076_s15 + $0x50] sm:$0xff]  ;;  %v342_v13 = vld [vmem:[%s3076_s15 + $0x58] sm:$0xff]  ;;  %2704 = vmatprep.subr.mxu1 %v3127_v20 }
  0x12   : > { %v343_v14 = vld [vmem:[%s3076_s15 + $0x60] sm:$0xff]  ;;  %v344_v15 = vld [vmem:[%s3076_s15 + $0x68] sm:$0xff]  ;;  %v345_v16 = vld [vmem:[%s3076_s15 + $0x70] sm:$0xff]  ;;  %2705 = vmatpush3.msra.mxu1 %v3127_v20  ;;  %2732 = vmatprep.subr.mxu0 %v806_v22 }
  0x13   : > { %v346_v17 = vld [vmem:[%s3076_s15 + $0x78] sm:$0xff]  ;;  %2706 = vmatprep.subr.mxu1 %v3134_v21  ;;  %2733 = vmatpush3.msra.mxu0 %v806_v22  ;;  %v804_v25 = vld [vmem:[%s3555_s4 + $0x8] sm:$0xff]  ;;  %v803_v26 = vld [vmem:[%s3555_s4] sm:$0xff]  ;;  %s3009_s15 = smov 96  }
  0x14   : > { %2680 = vmatmul.mubr.msk.f32.gmra.mxu0 %vm378_vm0, %v334_v5  ;;  %2707 = vmatpush3.msra.mxu1 %v3134_v21  ;;  %v3160_v30 = vld [vmem:[%s3558_s7] sm:$0xff]  ;;  %v349_v22 = vld [vmem:[%s3184_s18 + $0x10] sm:$0xff]  ;;  %v354_v27 = vld [vmem:[%s3184_s18 + $0x38] sm:$0xff] }
  0x15   : > { %2682 = vmatprep.mubr.msk.f32.mxu0 %vm378_vm0, %v335_v6  ;;  %2764 = vmatprep.subr.msk.mxu1 %vm1049_vm1, %v802_v23  ;;  %v377_v31 = vrot.slane %v3160_v30, %v376_v29  ;;  %v355_v29 = vld [vmem:[%s3184_s18 + $0x40] sm:$0xff] }
  0x16   : > { %2734 = vmatprep.subr.mxu0 %v805_v24  ;;  %1506 = vrot.lane.b32.xlu0 %v3113_v18, %s3009_s15 }
  0x17   : > { %2735 = vmatpush3.msra.mxu0 %v805_v24  ;;  %v351_v24 = vld [vmem:[%s3184_s18 + $0x20] sm:$0xff]  ;;  %1502 = vrot.lane.b32.xlu1 %v3127_v20, %s3009_s15 }
  0x18   : > { %2683 = vmatmul.mubr.msk.f32.gmra.mxu0 %vm378_vm0, %v336_v7  ;;  %2736 = vmatprep.subr.mxu0 %v804_v25 }
  0x19   : > { %2685 = vmatprep.mubr.msk.f32.mxu0 %vm378_vm0, %v337_v8  ;;  %2737 = vmatpush3.msra.mxu0 %v804_v25  ;;  %v352_v25 = vld [vmem:[%s3184_s18 + $0x28] sm:$0xff] }
  0x1a   : > { %2738 = vmatprep.subr.mxu0 %v803_v26  ;;  %1504 = vrot.lane.b32.xlu0 %v3120_v19, %s3009_s15 }
  0x1b   : > { %2739 = vmatpush3.msra.mxu0 %v803_v26  ;;  %v353_v26 = vld [vmem:[%s3184_s18 + $0x30] sm:$0xff]  ;;  %1500 = vrot.lane.b32.xlu1 %v3134_v21, %s3009_s15 }
  0x1c   : > { %2686 = vmatmul.mubr.msk.f32.gmra.mxu0 %vm378_vm0, %v338_v9 }
  0x1d   : > { %2688 = vmatprep.mubr.msk.f32.mxu0 %vm378_vm0, %v339_v10 }
  0x1e   : > { %1731 = vrot.lane.b32.xlu0 %v3113_v18, %s3010_s16 }
  0x1f   : > { %1729 = vrot.lane.b32.xlu1 %v3120_v19, %s3010_s16 }
  0x20   : > { %2689 = vmatmul.mubr.msk.f32.gmra.mxu0 %vm378_vm0, %v340_v11 }
  0x21   : > { %2691 = vmatprep.mubr.msk.f32.mxu0 %vm378_vm0, %v341_v12 }
  0x22   : > { %1727 = vrot.lane.b32.xlu0 %v3127_v20, %s3010_s16 }
  0x23   : > { %1725 = vrot.lane.b32.xlu1 %v3134_v21, %s3010_s16 }
  0x24   : > { %2692 = vmatmul.mubr.msk.f32.gmra.mxu0 %vm378_vm0, %v342_v13 }
  0x25   : > { %2694 = vmatprep.mubr.msk.f32.mxu0 %vm378_vm0, %v343_v14 }
  0x28   : > { %2695 = vmatmul.mubr.msk.f32.gmra.mxu0 %vm378_vm0, %v344_v15 }
  0x29   : > { %2697 = vmatprep.mubr.msk.f32.mxu0 %vm378_vm0, %v345_v16  ;;  %v347_v16 = vld [vmem:[%s3184_s18] sm:$0xff] }
  0x2c   : > { %2698 = vmatmul.mubr.msk.f32.gmra.mxu0 %vm378_vm0, %v346_v17  ;;  %v348_v17 = vld [vmem:[%s3184_s18 + $0x8] sm:$0xff] }
  0xd0   : > { %v2678_v32 = vpop.f32.mrf.mxu0 }
  0xd1   : > { %v499_v33 = vadd.f32 %v2678_v32, %v377_v31  ;;  %v357_v32 = vld [vmem:[%s3184_s18 + $0x50] sm:$0xff] }
  0xd2   : > { %v493_v34 = vpop.f32.mrf.mxu0 }
  0xd3   : > { %v494_v35 = vadd.f32 %v493_v34, %v377_v31  ;;  %v573_v39 = vmax.f32 %v499_v33, 0.0  ;;  %v358_v33 = vld [vmem:[%s3184_s18 + $0x58] sm:$0xff]  ;;  %v359_v34 = vld [vmem:[%s3184_s18 + $0x60] sm:$0xff] }
  0xd4   : > { %v2681_v36 = vpop.f32.mrf.mxu0 }
  0xd5   : > { %v572_v37 = vmax.f32 %v494_v35, 0.0  ;;  %v509_v38 = vadd.f32 %v2681_v36, %v377_v31  ;;  %v360_v35 = vld [vmem:[%s3184_s18 + $0x68] sm:$0xff]  ;;  %v361_v36 = vld [vmem:[%s3184_s18 + $0x70] sm:$0xff] }
  0xd6   : > { %v503_v40 = vpop.f32.mrf.mxu0 }
  0xd7   : > { %v504_v41 = vadd.f32 %v503_v40, %v377_v31  ;;  %2708 = vmatprep.mubr.msk.f32.mxu1 %vm592_vm2, %v572_v37  ;;  %v575_v42 = vmax.f32 %v509_v38, 0.0  ;;  %v362_v37 = vld [vmem:[%s3184_s18 + $0x78] sm:$0xff] }
  0xd8   : > { %v2684_v43 = vpop.f32.mrf.mxu0  ;;  %2709 = vmatmul.mubr.msk.f32.vlgmr.msra.gmra.mxu1 %vm592_vm2, %v573_v39  ;;  %v1277_v38 = vld [vmem:[%s3556_s5 + $0x38] sm:$0xff]  ;;  %v590_v39 = vsub.s32 1, %v3154_v28 }
  0xd9   : > { %v574_v44 = vmax.f32 %v504_v41, 0.0  ;;  %v519_v45 = vadd.f32 %v2684_v43, %v377_v31  ;;  %2765 = vmatpush3.msk.msra.mxu1 %vm1049_vm1, %v802_v23  ;;  %v350_v23 = vld [vmem:[%s3184_s18 + $0x18] sm:$0xff]  ;;  %2790 = vmatprep.subr.mxu0 %v1277_v38 }
  0xda   : > { %v513_v46 = vpop.f32.mrf.mxu0  ;;  %v3223_v40 = vrot.slane %v3160_v30, %v590_v39 }
  0xdb   : > { %v514_v47 = vadd.f32 %v513_v46, %v377_v31  ;;  %2711 = vmatprep.mubr.msk.f32.mxu1 %vm592_vm2, %v574_v44  ;;  %v577_v48 = vmax.f32 %v519_v45, 0.0 }
  0xdc   : > { %v2687_v49 = vpop.f32.mrf.mxu0  ;;  %2712 = vmatmul.mubr.msk.f32.gmra.mxu1 %vm592_vm2, %v575_v42 }
  0xdd   : > { %v576_v50 = vmax.f32 %v514_v47, 0.0  ;;  %v529_v51 = vadd.f32 %v2687_v49, %v377_v31 }
  0xde   : > { %v523_v52 = vpop.f32.mrf.mxu0 }
  0xdf   : > { %v524_v53 = vadd.f32 %v523_v52, %v377_v31  ;;  %2714 = vmatprep.mubr.msk.f32.mxu1 %vm592_vm2, %v576_v50  ;;  %v579_v54 = vmax.f32 %v529_v51, 0.0  ;;  %v1276_v51 = vld [vmem:[%s3556_s5 + $0x30] sm:$0xff] }
  0xe0   : > { %v2690_v55 = vpop.f32.mrf.mxu0  ;;  %2715 = vmatmul.mubr.msk.f32.gmra.mxu1 %vm592_vm2, %v577_v48 }
  0xe1   : > { %v578_v56 = vmax.f32 %v524_v53, 0.0  ;;  %v539_v57 = vadd.f32 %v2690_v55, %v377_v31 }
  0xe2   : > { %v533_v58 = vpop.f32.mrf.mxu0 }
  0xe3   : > { %v534_v59 = vadd.f32 %v533_v58, %v377_v31  ;;  %2717 = vmatprep.mubr.msk.f32.mxu1 %vm592_vm2, %v578_v56  ;;  %v581_v60 = vmax.f32 %v539_v57, 0.0 }
  0xe4   : > { %v2693_v61 = vpop.f32.mrf.mxu0  ;;  %2718 = vmatmul.mubr.msk.f32.gmra.mxu1 %vm592_vm2, %v579_v54  ;;  %v1275_v54 = vld [vmem:[%s3556_s5 + $0x28] sm:$0xff] }
  0xe5   : > { %v580_v62 = vmax.f32 %v534_v59, 0.0  ;;  %v549_v63 = vadd.f32 %v2693_v61, %v377_v31  ;;  %v1274_v59 = vld [vmem:[%s3556_s5 + $0x20] sm:$0xff] }
  0xe6   : > { %v543_v0 = vpop.f32.mrf.mxu0 }
  0xe7   : > { %v544_v1 = vadd.f32 %v543_v0, %v377_v31  ;;  %2720 = vmatprep.mubr.msk.f32.mxu1 %vm592_vm2, %v580_v62  ;;  %v583_v2 = vmax.f32 %v549_v63, 0.0  ;;  %v1273_v62 = vld [vmem:[%s3556_s5 + $0x18] sm:$0xff] }
  0xe8   : > { %v2696_v3 = vpop.f32.mrf.mxu0  ;;  %2721 = vmatmul.mubr.msk.f32.gmra.mxu1 %vm592_vm2, %v581_v60 }
  0xe9   : > { %v582_v4 = vmax.f32 %v544_v1, 0.0  ;;  %v559_v5 = vadd.f32 %v2696_v3, %v377_v31 }
  0xea   : > { %v553_v6 = vpop.f32.mrf.mxu0 }
  0xeb   : > { %v554_v7 = vadd.f32 %v553_v6, %v377_v31  ;;  %2723 = vmatprep.mubr.msk.f32.mxu1 %vm592_vm2, %v582_v4  ;;  %v585_v8 = vmax.f32 %v559_v5, 0.0 }
  0xec   : > { %v2699_v9 = vpop.f32.mrf.mxu0  ;;  %2724 = vmatmul.mubr.msk.f32.gmra.mxu1 %vm592_vm2, %v583_v2 }
  0xed   : > { %v584_v10 = vmax.f32 %v554_v7, 0.0  ;;  %v569_v11 = vadd.f32 %v2699_v9, %v377_v31 }
  0xee   : > { %v563_v12 = vpop.f32.mrf.mxu0 }
  0xef   : > { %v564_v13 = vadd.f32 %v563_v12, %v377_v31  ;;  %2726 = vmatprep.mubr.msk.f32.mxu1 %vm592_vm2, %v584_v10  ;;  %v587_v14 = vmax.f32 %v569_v11, 0.0  ;;  %v356_v31 = vld [vmem:[%s3184_s18 + $0x48] sm:$0xff] }
  0xf0   : > { %2727 = vmatmul.mubr.msk.f32.gmra.mxu1 %vm592_vm2, %v585_v8 }
  0xf1   : > { %v586_v15 = vmax.f32 %v564_v13, 0.0 }
  0xf3   : > { %2729 = vmatprep.mubr.msk.f32.mxu1 %vm592_vm2, %v586_v15 }
  0xf4   : > { %2730 = vmatmul.mubr.msk.f32.gmra.mxu1 %vm592_vm2, %v587_v14 }
  0xf5   : > { %2766 = vmatprep.mubr.msk.f32.mxu1 %vm1000_vm3, %v347_v16 }
  0xf8   : > { %2767 = vmatmul.mubr.msk.f32.vlgmr.msra.gmra.mxu1 %vm1000_vm3, %v348_v17 }
  0xf9   : > { %2769 = vmatprep.mubr.msk.f32.mxu1 %vm1000_vm3, %v349_v22 }
  0xfc   : > { %2770 = vmatmul.mubr.msk.f32.gmra.mxu1 %vm1000_vm3, %v350_v23 }
  0xfd   : > { %2772 = vmatprep.mubr.msk.f32.mxu1 %vm1000_vm3, %v351_v24 }
 0x100   : > { %2773 = vmatmul.mubr.msk.f32.gmra.mxu1 %vm1000_vm3, %v352_v25 }
 0x101   : > { %2775 = vmatprep.mubr.msk.f32.mxu1 %vm1000_vm3, %v353_v26 }
 0x104   : > { %2776 = vmatmul.mubr.msk.f32.gmra.mxu1 %vm1000_vm3, %v354_v27 }
 0x105   : > { %2778 = vmatprep.mubr.msk.f32.mxu1 %vm1000_vm3, %v355_v29 }
 0x108   : > { %2779 = vmatmul.mubr.msk.f32.gmra.mxu1 %vm1000_vm3, %v356_v31 }
 0x109   : > { %2781 = vmatprep.mubr.msk.f32.mxu1 %vm1000_vm3, %v357_v32 }
 0x10c   : > { %2782 = vmatmul.mubr.msk.f32.gmra.mxu1 %vm1000_vm3, %v358_v33 }
 0x10d   : > { %2784 = vmatprep.mubr.msk.f32.mxu1 %vm1000_vm3, %v359_v34 }
 0x110   : > { %2785 = vmatmul.mubr.msk.f32.gmra.mxu1 %vm1000_vm3, %v360_v35  ;;  %v1272_v35 = vld [vmem:[%s3556_s5 + $0x10] sm:$0xff] }
 0x111   : > { %2787 = vmatprep.mubr.msk.f32.mxu1 %vm1000_vm3, %v361_v36  ;;  %v1271_v36 = vld [vmem:[%s3556_s5 + $0x8] sm:$0xff] }
 0x114   : > { %2788 = vmatmul.mubr.msk.f32.gmra.mxu1 %vm1000_vm3, %v362_v37  ;;  %v1270_v37 = vld [vmem:[%s3556_s5] sm:$0xff] }
 0x198   : > { %v2710_v41 = vpop.f32.mrf.mxu1 }
 0x199   : > { %v713_v42 = vadd.f32 %v2710_v41, %v3223_v40 }
 0x19a   : > { %v707_v43 = vpop.f32.mrf.mxu1 }
 0x19b   : > { %v708_v44 = vadd.f32 %v707_v43, %v3223_v40  ;;  %v787_v47 = vmax.f32 %v713_v42, 0.0 }
 0x19c   : > { %v2713_v45 = vpop.f32.mrf.mxu1 }
 0x19d   : > { %v786_v46 = vmax.f32 %v708_v44, 0.0  ;;  %v723_v48 = vadd.f32 %v2713_v45, %v3223_v40  ;;  %v1200_v45 = vsub.s32 2, %v3154_v28 }
 0x19e   : > { %v717_v49 = vpop.f32.mrf.mxu1 }
 0x19f   : > { %v718_v50 = vadd.f32 %v717_v49, %v3223_v40  ;;  %2740 = vmatprep.mubr.msk.f32.mxu0 %vm592_vm2, %v786_v46  ;;  %v789_v55 = vmax.f32 %v723_v48, 0.0  ;;  %v1236_v49 = vsub.s32 7, %v3154_v28 }
 0x1a0   : > { %v2716_v52 = vpop.f32.mrf.mxu1  ;;  %2741 = vmatmul.mubr.msk.f32.vlgmr.msra.gmra.mxu0 %vm592_vm2, %v787_v47  ;;  %v3284_v47 = vrot.slane %v3160_v30, %v1200_v45 }
 0x1a1   : > { %v788_v53 = vmax.f32 %v718_v50, 0.0  ;;  %2791 = vmatpush3.msra.mxu0 %v1277_v38  ;;  %v733_v56 = vadd.f32 %v2716_v52, %v3223_v40 }
 0x1a2   : > { %v727_v57 = vpop.f32.mrf.mxu1  ;;  %2792 = vmatprep.subr.mxu0 %v1276_v51 }
 0x1a3   : > { %v728_v58 = vadd.f32 %v727_v57, %v3223_v40  ;;  %2743 = vmatprep.mubr.msk.f32.mxu0 %vm592_vm2, %v788_v53  ;;  %2793 = vmatpush3.msra.mxu0 %v1276_v51  ;;  %v791_v63 = vmax.f32 %v733_v56, 0.0 }
 0x1a4   : > { %v2719_v60 = vpop.f32.mrf.mxu1  ;;  %2744 = vmatmul.mubr.msk.f32.gmra.mxu0 %vm592_vm2, %v789_v55  ;;  %2794 = vmatprep.subr.mxu0 %v1275_v54  ;;  %v3289_v55 = vrot.slane %v3160_v30, %v1236_v49 }
 0x1a5   : > { %v790_v61 = vmax.f32 %v728_v58, 0.0  ;;  %2795 = vmatpush3.msra.mxu0 %v1275_v54  ;;  %v743_v0 = vadd.f32 %v2719_v60, %v3223_v40 }
 0x1a6   : > { %v737_v1 = vpop.f32.mrf.mxu1  ;;  %2796 = vmatprep.subr.mxu0 %v1274_v59 }
 0x1a7   : > { %v738_v2 = vadd.f32 %v737_v1, %v3223_v40  ;;  %2746 = vmatprep.mubr.msk.f32.mxu0 %vm592_vm2, %v790_v61  ;;  %2797 = vmatpush3.msra.mxu0 %v1274_v59  ;;  %v793_v5 = vmax.f32 %v743_v0, 0.0 }
 0x1a8   : > { %v2722_v3 = vpop.f32.mrf.mxu1  ;;  %2747 = vmatmul.mubr.msk.f32.gmra.mxu0 %vm592_vm2, %v791_v63  ;;  %2798 = vmatprep.subr.mxu0 %v1273_v62 }
 0x1a9   : > { %v792_v4 = vmax.f32 %v738_v2, 0.0  ;;  %2799 = vmatpush3.msra.mxu0 %v1273_v62  ;;  %v753_v6 = vadd.f32 %v2722_v3, %v3223_v40 }
 0x1aa   : > { %v747_v7 = vpop.f32.mrf.mxu1  ;;  %2800 = vmatprep.subr.mxu0 %v1272_v35 }
 0x1ab   : > { %v748_v8 = vadd.f32 %v747_v7, %v3223_v40  ;;  %2749 = vmatprep.mubr.msk.f32.mxu0 %vm592_vm2, %v792_v4  ;;  %v795_v11 = vmax.f32 %v753_v6, 0.0  ;;  %2801 = vmatpush3.msra.mxu0 %v1272_v35 }
 0x1ac   : > { %v2725_v9 = vpop.f32.mrf.mxu1  ;;  %2750 = vmatmul.mubr.msk.f32.gmra.mxu0 %vm592_vm2, %v793_v5  ;;  %2802 = vmatprep.subr.mxu0 %v1271_v36 }
 0x1ad   : > { %v794_v10 = vmax.f32 %v748_v8, 0.0  ;;  %v763_v12 = vadd.f32 %v2725_v9, %v3223_v40  ;;  %2803 = vmatpush3.msra.mxu0 %v1271_v36 }
 0x1ae   : > { %v757_v13 = vpop.f32.mrf.mxu1  ;;  %2804 = vmatprep.subr.mxu0 %v1270_v37 }
 0x1af   : > { %v758_v14 = vadd.f32 %v757_v13, %v3223_v40  ;;  %2752 = vmatprep.mubr.msk.f32.mxu0 %vm592_vm2, %v794_v10  ;;  %v797_v17 = vmax.f32 %v763_v12, 0.0  ;;  %2805 = vmatpush3.msra.mxu0 %v1270_v37 }
 0x1b0   : > { %v2728_v15 = vpop.f32.mrf.mxu1  ;;  %2753 = vmatmul.mubr.msk.f32.gmra.mxu0 %vm592_vm2, %v795_v11 }
 0x1b1   : > { %v796_v16 = vmax.f32 %v758_v14, 0.0  ;;  %v773_v22 = vadd.f32 %v2728_v15, %v3223_v40 }
 0x1b2   : > { %v767_v23 = vpop.f32.mrf.mxu1 }
 0x1b3   : > { %v768_v24 = vadd.f32 %v767_v23, %v3223_v40  ;;  %2755 = vmatprep.mubr.msk.f32.mxu0 %vm592_vm2, %v796_v16  ;;  %v799_v27 = vmax.f32 %v773_v22, 0.0 }
 0x1b4   : > { %v2731_v25 = vpop.f32.mrf.mxu1  ;;  %2756 = vmatmul.mubr.msk.f32.gmra.mxu0 %vm592_vm2, %v797_v17 }
 0x1b5   : > { %v798_v26 = vmax.f32 %v768_v24, 0.0  ;;  %v783_v29 = vadd.f32 %v2731_v25, %v3223_v40 }
 0x1b6   : > { %v777_v31 = vpop.f32.mrf.mxu1 }
 0x1b7   : > { %v778_v32 = vadd.f32 %v777_v31, %v3223_v40  ;;  %2758 = vmatprep.mubr.msk.f32.mxu0 %vm592_vm2, %v798_v26  ;;  %v801_v34 = vmax.f32 %v783_v29, 0.0 }
 0x1b8   : > { %2759 = vmatmul.mubr.msk.f32.gmra.mxu0 %vm592_vm2, %v799_v27  ;;  %v2768_v38 = vpop.f32.mrf.mxu1 }
 0x1b9   : > { %v800_v33 = vmax.f32 %v778_v32, 0.0 }
 0x1ba   : > { %v1119_v39 = vpop.f32.mrf.mxu1 }
 0x1bb   : > { %2761 = vmatprep.mubr.msk.f32.mxu0 %vm592_vm2, %v800_v33 }
 0x1bc   : > { %2762 = vmatmul.mubr.msk.f32.gmra.mxu0 %vm592_vm2, %v801_v34  ;;  %v2771_v40 = vpop.f32.mrf.mxu1 }
 0x1be   : > { %v1129_v41 = vpop.f32.mrf.mxu1 }
 0x1c0   : > { %v2774_v42 = vpop.f32.mrf.mxu1 }
 0x1c2   : > { %v1139_v43 = vpop.f32.mrf.mxu1 }
 0x1c4   : > { %v2777_v44 = vpop.f32.mrf.mxu1 }
 0x1c6   : > { %v1149_v46 = vpop.f32.mrf.mxu1 }
 0x1c8   : > { %v2780_v50 = vpop.f32.mrf.mxu1 }
 0x1ca   : > { %v1159_v57 = vpop.f32.mrf.mxu1 }
 0x1cc   : > { %v2783_v3 = vpop.f32.mrf.mxu1 }
 0x1ce   : > { %v1169_v16 = vpop.f32.mrf.mxu1 }
 0x1d0   : > { %v2786_v35 = vpop.f32.mrf.mxu1 }
 0x1d2   : > { %v1179_v49 = vpop.f32.mrf.mxu1 }
 0x260   : > { %v2742_v48 = vpop.f32.mrf.mxu0 }
 0x261   : > { %v1125_v51 = vadd.f32 %v2768_v38, %v2742_v48 }
 0x262   : > { %v921_v52 = vpop.f32.mrf.mxu0 }
 0x263   : > { %v1203_v53 = vadd.f32 %v3284_v47, %v1125_v51  ;;  %v1120_v54 = vadd.f32 %v1119_v39, %v921_v52 }
 0x264   : > { %v2745_v56 = vpop.f32.mrf.mxu0 }
 0x265   : > { %v1219_v58 = vmax.f32 %v1203_v53, 0.0  ;;  %v1202_v59 = vadd.f32 %v3284_v47, %v1120_v54  ;;  %v1135_v60 = vadd.f32 %v2771_v40, %v2745_v56 }
 0x266   : > { %v931_v61 = vpop.f32.mrf.mxu0 }
 0x267   : > { %v1218_v62 = vmax.f32 %v1202_v59, 0.0  ;;  %v1205_v63 = vadd.f32 %v3284_v47, %v1135_v60  ;;  %v1130_v0 = vadd.f32 %v1129_v41, %v931_v61  ;;  %v1239_v1 = vmul.f32 %v3289_v55, %v1219_v58 }
 0x268   : > { %v2748_v2 = vpop.f32.mrf.mxu0 }
 0x269   : > { %v1238_v4 = vmul.f32 %v3289_v55, %v1218_v62  ;;  %v1221_v5 = vmax.f32 %v1205_v63, 0.0  ;;  %v1204_v6 = vadd.f32 %v3284_v47, %v1130_v0  ;;  %v1145_v7 = vadd.f32 %v2774_v42, %v2748_v2  ;;  %v2789_v63 = vpop.f32.mrf.mxu1 }
 0x26a   : > { %v941_v8 = vpop.f32.mrf.mxu0  ;;  %v1255_v12 = vmul.f32 2.0, %v1239_v1 }
 0x26b   : > { %v1254_v9 = vmul.f32 2.0, %v1238_v4  ;;  %v1220_v10 = vmax.f32 %v1204_v6, 0.0  ;;  %v1140_v11 = vadd.f32 %v1139_v43, %v941_v8  ;;  %v1241_v13 = vmul.f32 %v3289_v55, %v1221_v5 }
 0x26c   : > { %v1207_v14 = vadd.f32 %v3284_v47, %v1145_v7  ;;  %v2751_v15 = vpop.f32.mrf.mxu0 }
 0x26d   : > { %v1240_v17 = vmul.f32 %v3289_v55, %v1220_v10  ;;  %v1206_v22 = vadd.f32 %v3284_v47, %v1140_v11  ;;  %v1155_v23 = vadd.f32 %v2777_v44, %v2751_v15  ;;  %2806 = vmatprep.mubr.msk.f32.mxu0 %vm1282_vm4, %v1254_v9  ;;  %v1257_v32 = vmul.f32 2.0, %v1241_v13  ;;  %v1189_v11 = vpop.f32.mrf.mxu1 }
 0x26e   : > { %v1223_v24 = vmax.f32 %v1207_v14, 0.0  ;;  %v951_v25 = vpop.f32.mrf.mxu0  ;;  %2807 = vmatmul.mubr.msk.f32.vlgmr.msra.gmra.mxu0 %vm1282_vm4, %v1255_v12 }
 0x26f   : > { %v1256_v26 = vmul.f32 2.0, %v1240_v17  ;;  %v1222_v27 = vmax.f32 %v1206_v22, 0.0  ;;  %v1209_v29 = vadd.f32 %v3284_v47, %v1155_v23  ;;  %v1150_v31 = vadd.f32 %v1149_v46, %v951_v25  ;;  %v1507_v22 = vpop.permute.xlu0 %1506 }
 0x270   : > { %v1243_v33 = vmul.f32 %v3289_v55, %v1223_v24  ;;  %v2754_v34 = vpop.f32.mrf.mxu0  ;;  %2830 = vmatprep.subr.mxu1 %v1507_v22 }
 0x271   : > { %v1242_v36 = vmul.f32 %v3289_v55, %v1222_v27  ;;  %v1225_v37 = vmax.f32 %v1209_v29, 0.0  ;;  %v1208_v38 = vadd.f32 %v3284_v47, %v1150_v31  ;;  %v1165_v39 = vadd.f32 %v2780_v50, %v2754_v34  ;;  %2809 = vmatprep.mubr.msk.f32.mxu0 %vm1282_vm4, %v1256_v26  ;;  %v1503_v26 = vpop.permute.xlu1 %1502  ;;  %2831 = vmatpush3.msra.mxu1 %v1507_v22 }
 0x272   : > { %v961_v40 = vpop.f32.mrf.mxu0  ;;  %2810 = vmatmul.mubr.msk.f32.gmra.mxu0 %vm1282_vm4, %v1257_v32  ;;  %v1259_v44 = vmul.f32 2.0, %v1243_v33 }
 0x273   : > { %v1258_v41 = vmul.f32 2.0, %v1242_v36  ;;  %v1224_v42 = vmax.f32 %v1208_v38, 0.0  ;;  %v1211_v43 = vadd.f32 %v3284_v47, %v1165_v39  ;;  %v1245_v45 = vmul.f32 %v3289_v55, %v1225_v37 }
 0x274   : > { %v1160_v46 = vadd.f32 %v1159_v57, %v961_v40  ;;  %v2757_v48 = vpop.f32.mrf.mxu0 }
 0x275   : > { %v1244_v51 = vmul.f32 %v3289_v55, %v1224_v42  ;;  %v1227_v52 = vmax.f32 %v1211_v43, 0.0  ;;  %v1175_v53 = vadd.f32 %v2783_v3, %v2757_v48  ;;  %2812 = vmatprep.mubr.msk.f32.mxu0 %vm1282_vm4, %v1258_v41  ;;  %v1261_v60 = vmul.f32 2.0, %v1245_v45  ;;  %v1501_v38 = vpop.permute.xlu1 %1500 }
 0x276   : > { %v1210_v50 = vadd.f32 %v3284_v47, %v1160_v46  ;;  %v971_v54 = vpop.f32.mrf.mxu0  ;;  %2813 = vmatmul.mubr.msk.f32.gmra.mxu0 %vm1282_vm4, %v1259_v44 }
 0x277   : > { %v1260_v56 = vmul.f32 2.0, %v1244_v51  ;;  %v1213_v58 = vadd.f32 %v3284_v47, %v1175_v53  ;;  %v1170_v59 = vadd.f32 %v1169_v16, %v971_v54  ;;  %v1247_v57 = vmul.f32 %v3289_v55, %v1227_v52 }
 0x278   : > { %v1226_v61 = vmax.f32 %v1210_v50, 0.0  ;;  %v2760_v62 = vpop.f32.mrf.mxu0 }
 0x279   : > { %v1229_v0 = vmax.f32 %v1213_v58, 0.0  ;;  %v1212_v1 = vadd.f32 %v3284_v47, %v1170_v59  ;;  %v1185_v2 = vadd.f32 %v2786_v35, %v2760_v62  ;;  %2815 = vmatprep.mubr.msk.f32.mxu0 %vm1282_vm4, %v1260_v56  ;;  %v1263_v8 = vmul.f32 2.0, %v1247_v57  ;;  %v1505_v35 = vpop.permute.xlu0 %1504 }
 0x27a   : > { %v1246_v3 = vmul.f32 %v3289_v55, %v1226_v61  ;;  %v981_v4 = vpop.f32.mrf.mxu0  ;;  %2816 = vmatmul.mubr.msk.f32.gmra.mxu0 %vm1282_vm4, %v1261_v60  ;;  %2832 = vmatprep.subr.mxu1 %v1505_v35 }
 0x27b   : > { %v1228_v5 = vmax.f32 %v1212_v1, 0.0  ;;  %v1215_v6 = vadd.f32 %v3284_v47, %v1185_v2  ;;  %v1180_v7 = vadd.f32 %v1179_v49, %v981_v4  ;;  %v1249_v12 = vmul.f32 %v3289_v55, %v1229_v0  ;;  %2833 = vmatpush3.msra.mxu1 %v1505_v35 }
 0x27c   : > { %v1262_v9 = vmul.f32 2.0, %v1246_v3  ;;  %v2763_v10 = vpop.f32.mrf.mxu0  ;;  %2834 = vmatprep.subr.mxu1 %v1503_v26 }
 0x27d   : > { %v1248_v13 = vmul.f32 %v3289_v55, %v1228_v5  ;;  %v1231_v14 = vmax.f32 %v1215_v6, 0.0  ;;  %v1214_v15 = vadd.f32 %v3284_v47, %v1180_v7  ;;  %v1195_v16 = vadd.f32 %v2789_v63, %v2763_v10  ;;  %2835 = vmatpush3.msra.mxu1 %v1503_v26 }
 0x27e   : > { %2818 = vmatprep.mubr.msk.f32.mxu0 %vm1282_vm4, %v1262_v9  ;;  %v991_v17 = vpop.f32.mrf.mxu0  ;;  %v1265_v29 = vmul.f32 2.0, %v1249_v12  ;;  %2836 = vmatprep.subr.mxu1 %v1501_v38  ;;  %v1732_v12 = vpop.permute.xlu0 %1731 }
 0x27f   : > { %v1264_v23 = vmul.f32 2.0, %v1248_v13  ;;  %v1230_v24 = vmax.f32 %v1214_v15, 0.0  ;;  %v1190_v25 = vadd.f32 %v1189_v11, %v991_v17  ;;  %2819 = vmatmul.mubr.msk.f32.gmra.mxu0 %vm1282_vm4, %v1263_v8  ;;  %v1217_v27 = vadd.f32 %v3284_v47, %v1195_v16  ;;  %2837 = vmatpush3.msra.mxu1 %v1501_v38  ;;  %v1730_v13 = vpop.permute.xlu1 %1729  ;;  %v365_v38 = vld [vmem:[%s3557_s6 + $0x10] sm:$0xff] }
 0x280   : > { %v1251_v31 = vmul.f32 %v3289_v55, %v1231_v14  ;;  %2862 = vmatprep.subr.mxu0 %v1732_v12 }
 0x281   : > { %v1250_v32 = vmul.f32 %v3289_v55, %v1230_v24  ;;  %v1216_v33 = vadd.f32 %v3284_v47, %v1190_v25  ;;  %2821 = vmatprep.mubr.msk.f32.mxu0 %vm1282_vm4, %v1264_v23  ;;  %v1233_v34 = vmax.f32 %v1217_v27, 0.0  ;;  %2863 = vmatpush3.msra.mxu0 %v1732_v12 }
 0x282   : > { %v1267_v39 = vmul.f32 2.0, %v1251_v31  ;;  %2864 = vmatprep.subr.mxu0 %v1730_v13  ;;  %v1728_v24 = vpop.permute.xlu0 %1727 }
 0x283   : > { %v1266_v36 = vmul.f32 2.0, %v1250_v32  ;;  %v1232_v37 = vmax.f32 %v1216_v33, 0.0  ;;  %2822 = vmatmul.mubr.msk.f32.gmra.mxu0 %vm1282_vm4, %v1265_v29  ;;  %v1253_v40 = vmul.f32 %v3289_v55, %v1233_v34  ;;  %v1726_v25 = vpop.permute.xlu1 %1725 }
 0x284   : > { %2865 = vmatpush3.msra.mxu0 %v1730_v13 }
 0x285   : > { %v1252_v41 = vmul.f32 %v3289_v55, %v1232_v37  ;;  %2824 = vmatprep.mubr.msk.f32.mxu0 %vm1282_vm4, %v1266_v36  ;;  %v1269_v42 = vmul.f32 2.0, %v1253_v40  ;;  %v1280_v55 = vsub.s32 3, %v3154_v28  ;;  %2866 = vmatprep.subr.mxu0 %v1728_v24  ;;  %v369_v36 = vld [vmem:[%s3557_s6 + $0x30] sm:$0xff]  ;;  %v367_v37 = vld [vmem:[%s3557_s6 + $0x20] sm:$0xff]  ;;  %v1494_v40 = vsub.s32 4, %v3154_v28 }
 0x286   : > { %2867 = vmatpush3.msra.mxu0 %v1728_v24  ;;  %2894 = vmatprep.subr.mxu1 %v369_v36 }
 0x287   : > { %v1268_v47 = vmul.f32 2.0, %v1252_v41  ;;  %2825 = vmatmul.mubr.msk.f32.gmra.mxu0 %vm1282_vm4, %v1267_v39  ;;  %v3344_v43 = vrot.slane %v3160_v30, %v1280_v55  ;;  %2868 = vmatprep.subr.mxu0 %v1726_v25  ;;  %v363_v39 = vld [vmem:[%s3557_s6] sm:$0xff]  ;;  %v1495_v41 = vrot.slane %v3160_v30, %v1494_v40 }
 0x288   : > { %2869 = vmatpush3.msra.mxu0 %v1726_v25 }
 0x289   : > { %2827 = vmatprep.mubr.msk.f32.mxu0 %vm1282_vm4, %v1268_v47 }
 0x28b   : > { %2828 = vmatmul.mubr.msk.f32.gmra.mxu0 %vm1282_vm4, %v1269_v42 }
 0x32e   : > { %v2808_v44 = vpop.f32.mrf.mxu0 }
 0x32f   : > { %v1403_v45 = vadd.f32 %v2808_v44, %v3344_v43 }
 0x330   : > { %v1397_v46 = vpop.f32.mrf.mxu0 }
 0x331   : > { %v1398_v48 = vadd.f32 %v1397_v46, %v3344_v43  ;;  %v1477_v18 = vmax.f32 %v1403_v45, 0.0 }
 0x332   : > { %v2811_v49 = vpop.f32.mrf.mxu0 }
 0x333   : > { %v1476_v51 = vmax.f32 %v1398_v48, 0.0  ;;  %v1413_v19 = vadd.f32 %v2811_v49, %v3344_v43 }
 0x334   : > { %v1407_v52 = vpop.f32.mrf.mxu0 }
 0x335   : > { %v1408_v20 = vadd.f32 %v1407_v52, %v3344_v43  ;;  %2838 = vmatprep.mubr.msk.f32.mxu1 %vm592_vm2, %v1476_v51  ;;  %v1479_v50 = vmax.f32 %v1413_v19, 0.0 }
 0x336   : > { %v2814_v21 = vpop.f32.mrf.mxu0  ;;  %2839 = vmatmul.mubr.msk.f32.vlgmr.msra.gmra.mxu1 %vm592_vm2, %v1477_v18 }
 0x337   : > { %v1478_v53 = vmax.f32 %v1408_v20, 0.0  ;;  %v1423_v54 = vadd.f32 %v2814_v21, %v3344_v43  ;;  %2895 = vmatpush3.msra.mxu1 %v369_v36 }
 0x338   : > { %v1417_v56 = vpop.f32.mrf.mxu0  ;;  %2896 = vmatprep.subr.mxu1 %v367_v37 }
 0x339   : > { %v1418_v58 = vadd.f32 %v1417_v56, %v3344_v43  ;;  %2841 = vmatprep.mubr.msk.f32.mxu1 %vm592_vm2, %v1478_v53  ;;  %v1481_v57 = vmax.f32 %v1423_v54, 0.0  ;;  %2897 = vmatpush3.msra.mxu1 %v367_v37 }
 0x33a   : > { %v2817_v59 = vpop.f32.mrf.mxu0  ;;  %2842 = vmatmul.mubr.msk.f32.gmra.mxu1 %vm592_vm2, %v1479_v50  ;;  %2898 = vmatprep.subr.mxu1 %v365_v38 }
 0x33b   : > { %v1480_v60 = vmax.f32 %v1418_v58, 0.0  ;;  %v1433_v61 = vadd.f32 %v2817_v59, %v3344_v43  ;;  %2899 = vmatpush3.msra.mxu1 %v365_v38 }
 0x33c   : > { %v1427_v62 = vpop.f32.mrf.mxu0  ;;  %2900 = vmatprep.subr.mxu1 %v363_v39 }
 0x33d   : > { %v1428_v63 = vadd.f32 %v1427_v62, %v3344_v43  ;;  %2844 = vmatprep.mubr.msk.f32.mxu1 %vm592_vm2, %v1480_v60  ;;  %v1483_v2 = vmax.f32 %v1433_v61, 0.0  ;;  %2901 = vmatpush3.msra.mxu1 %v363_v39 }
 0x33e   : > { %2845 = vmatmul.mubr.msk.f32.gmra.mxu1 %vm592_vm2, %v1481_v57 }
 0x33f   : > { %v1482_v0 = vmax.f32 %v1428_v63, 0.0  ;;  %v2820_v1 = vpop.f32.mrf.mxu0 }
 0x340   : > { %v1443_v3 = vadd.f32 %v2820_v1, %v3344_v43 }
 0x341   : > { %v1437_v4 = vpop.f32.mrf.mxu0  ;;  %2847 = vmatprep.mubr.msk.f32.mxu1 %vm592_vm2, %v1482_v0 }
 0x342   : > { %v1438_v5 = vadd.f32 %v1437_v4, %v3344_v43  ;;  %2848 = vmatmul.mubr.msk.f32.gmra.mxu1 %vm592_vm2, %v1483_v2  ;;  %v1485_v8 = vmax.f32 %v1443_v3, 0.0 }
 0x343   : > { %v2823_v6 = vpop.f32.mrf.mxu0 }
 0x344   : > { %v1484_v7 = vmax.f32 %v1438_v5, 0.0  ;;  %v1453_v9 = vadd.f32 %v2823_v6, %v3344_v43 }
 0x345   : > { %v1447_v10 = vpop.f32.mrf.mxu0 }
 0x346   : > { %v1448_v11 = vadd.f32 %v1447_v10, %v3344_v43  ;;  %2850 = vmatprep.mubr.msk.f32.mxu1 %vm592_vm2, %v1484_v7  ;;  %v1487_v16 = vmax.f32 %v1453_v9, 0.0 }
 0x347   : > { %v2826_v14 = vpop.f32.mrf.mxu0  ;;  %2851 = vmatmul.mubr.msk.f32.gmra.mxu1 %vm592_vm2, %v1485_v8 }
 0x348   : > { %v1486_v15 = vmax.f32 %v1448_v11, 0.0  ;;  %v1463_v17 = vadd.f32 %v2826_v14, %v3344_v43 }
 0x349   : > { %v1457_v22 = vpop.f32.mrf.mxu0 }
 0x34a   : > { %v1458_v23 = vadd.f32 %v1457_v22, %v3344_v43  ;;  %2853 = vmatprep.mubr.msk.f32.mxu1 %vm592_vm2, %v1486_v15  ;;  %v1489_v29 = vmax.f32 %v1463_v17, 0.0 }
 0x34b   : > { %v2829_v26 = vpop.f32.mrf.mxu0  ;;  %2854 = vmatmul.mubr.msk.f32.gmra.mxu1 %vm592_vm2, %v1487_v16 }
 0x34c   : > { %v1488_v27 = vmax.f32 %v1458_v23, 0.0  ;;  %v1473_v31 = vadd.f32 %v2829_v26, %v3344_v43  ;;  %v1723_v26 = vsub.s32 5, %v3154_v28 }
 0x34d   : > { %v1467_v32 = vpop.f32.mrf.mxu0 }
 0x34e   : > { %v1468_v33 = vadd.f32 %v1467_v32, %v3344_v43  ;;  %2856 = vmatprep.mubr.msk.f32.mxu1 %vm592_vm2, %v1488_v27  ;;  %v1491_v35 = vmax.f32 %v1473_v31, 0.0  ;;  %v1724_v27 = vrot.slane %v3160_v30, %v1723_v26 }
 0x34f   : > { %2857 = vmatmul.mubr.msk.f32.gmra.mxu1 %vm592_vm2, %v1489_v29 }
 0x350   : > { %v1490_v34 = vmax.f32 %v1468_v33, 0.0 }
 0x352   : > { %2859 = vmatprep.mubr.msk.f32.mxu1 %vm592_vm2, %v1490_v34 }
 0x353   : > { %2860 = vmatmul.mubr.msk.f32.gmra.mxu1 %vm592_vm2, %v1491_v35 }
 0x3f6   : > { %v2840_v47 = vpop.f32.mrf.mxu1 }
 0x3f7   : > { %v1632_v42 = vadd.f32 %v2840_v47, %v1495_v41 }
 0x3f8   : > { %v1626_v55 = vpop.f32.mrf.mxu1 }
 0x3f9   : > { %v1627_v43 = vadd.f32 %v1626_v55, %v1495_v41  ;;  %v1706_v46 = vmax.f32 %v1632_v42, 0.0 }
 0x3fa   : > { %v2843_v44 = vpop.f32.mrf.mxu1 }
 0x3fb   : > { %v1705_v45 = vmax.f32 %v1627_v43, 0.0  ;;  %v1642_v48 = vadd.f32 %v2843_v44, %v1495_v41 }
 0x3fc   : > { %v1636_v49 = vpop.f32.mrf.mxu1 }
 0x3fd   : > { %v1637_v51 = vadd.f32 %v1636_v49, %v1495_v41  ;;  %2870 = vmatprep.mubr.msk.f32.mxu0 %vm592_vm2, %v1705_v45  ;;  %v1708_v52 = vmax.f32 %v1642_v48, 0.0 }
 0x3fe   : > { %v2846_v18 = vpop.f32.mrf.mxu1  ;;  %2871 = vmatmul.mubr.msk.f32.vlgmr.msra.gmra.mxu0 %vm592_vm2, %v1706_v46 }
 0x3ff   : > { %v1707_v19 = vmax.f32 %v1637_v51, 0.0  ;;  %v1652_v20 = vadd.f32 %v2846_v18, %v1495_v41 }
 0x400   : > { %v1646_v21 = vpop.f32.mrf.mxu1 }
 0x401   : > { %v1647_v53 = vadd.f32 %v1646_v21, %v1495_v41  ;;  %2873 = vmatprep.mubr.msk.f32.mxu0 %vm592_vm2, %v1707_v19  ;;  %v1710_v56 = vmax.f32 %v1652_v20, 0.0 }
 0x402   : > { %v2849_v50 = vpop.f32.mrf.mxu1  ;;  %2874 = vmatmul.mubr.msk.f32.gmra.mxu0 %vm592_vm2, %v1708_v52 }
 0x403   : > { %v1709_v54 = vmax.f32 %v1647_v53, 0.0  ;;  %v1662_v58 = vadd.f32 %v2849_v50, %v1495_v41 }
 0x404   : > { %v1656_v59 = vpop.f32.mrf.mxu1 }
 0x405   : > { %v1657_v60 = vadd.f32 %v1656_v59, %v1495_v41  ;;  %2876 = vmatprep.mubr.msk.f32.mxu0 %vm592_vm2, %v1709_v54  ;;  %v1712_v62 = vmax.f32 %v1662_v58, 0.0 }
 0x406   : > { %2877 = vmatmul.mubr.msk.f32.gmra.mxu0 %vm592_vm2, %v1710_v56 }
 0x407   : > { %v1711_v57 = vmax.f32 %v1657_v60, 0.0  ;;  %v2852_v61 = vpop.f32.mrf.mxu1 }
 0x408   : > { %v1672_v63 = vadd.f32 %v2852_v61, %v1495_v41 }
 0x409   : > { %v1666_v0 = vpop.f32.mrf.mxu1  ;;  %2879 = vmatprep.mubr.msk.f32.mxu0 %vm592_vm2, %v1711_v57 }
 0x40a   : > { %v1667_v1 = vadd.f32 %v1666_v0, %v1495_v41  ;;  %2880 = vmatmul.mubr.msk.f32.gmra.mxu0 %vm592_vm2, %v1712_v62  ;;  %v1714_v4 = vmax.f32 %v1672_v63, 0.0 }
 0x40b   : > { %v2855_v2 = vpop.f32.mrf.mxu1 }
 0x40c   : > { %v1713_v3 = vmax.f32 %v1667_v1, 0.0  ;;  %v1682_v5 = vadd.f32 %v2855_v2, %v1495_v41 }
 0x40d   : > { %v1676_v6 = vpop.f32.mrf.mxu1 }
 0x40e   : > { %v1677_v7 = vadd.f32 %v1676_v6, %v1495_v41  ;;  %2882 = vmatprep.mubr.msk.f32.mxu0 %vm592_vm2, %v1713_v3  ;;  %v1716_v10 = vmax.f32 %v1682_v5, 0.0 }
 0x40f   : > { %v2858_v8 = vpop.f32.mrf.mxu1  ;;  %2883 = vmatmul.mubr.msk.f32.gmra.mxu0 %vm592_vm2, %v1714_v4 }
 0x410   : > { %v1715_v9 = vmax.f32 %v1677_v7, 0.0  ;;  %v1692_v11 = vadd.f32 %v2858_v8, %v1495_v41 }
 0x411   : > { %v1686_v12 = vpop.f32.mrf.mxu1 }
 0x412   : > { %v1687_v13 = vadd.f32 %v1686_v12, %v1495_v41  ;;  %2885 = vmatprep.mubr.msk.f32.mxu0 %vm592_vm2, %v1715_v9  ;;  %v1718_v16 = vmax.f32 %v1692_v11, 0.0  ;;  %v1948_v9 = vsub.s32 6, %v3154_v28 }
 0x413   : > { %v2861_v14 = vpop.f32.mrf.mxu1  ;;  %2886 = vmatmul.mubr.msk.f32.gmra.mxu0 %vm592_vm2, %v1716_v10  ;;  %v3000_v10 = vld [vmem:[%s3558_s7] sm:$0xff] }
 0x414   : > { %v1717_v15 = vmax.f32 %v1687_v13, 0.0  ;;  %v1702_v17 = vadd.f32 %v2861_v14, %v1495_v41  ;;  %v1949_v11 = vrot.slane %v3000_v10, %v1948_v9 }
 0x415   : > { %v1696_v22 = vpop.f32.mrf.mxu1 }
 0x416   : > { %v1697_v23 = vadd.f32 %v1696_v22, %v1495_v41  ;;  %2888 = vmatprep.mubr.msk.f32.mxu0 %vm592_vm2, %v1717_v15  ;;  %v1720_v25 = vmax.f32 %v1702_v17, 0.0 }
 0x417   : > { %2889 = vmatmul.mubr.msk.f32.gmra.mxu0 %vm592_vm2, %v1718_v16 }
 0x418   : > { %v1719_v24 = vmax.f32 %v1697_v23, 0.0 }
 0x41a   : > { %2891 = vmatprep.mubr.msk.f32.mxu0 %vm592_vm2, %v1719_v24 }
 0x41b   : > { %2892 = vmatmul.mubr.msk.f32.gmra.mxu0 %vm592_vm2, %v1720_v25 }
 0x4be   : > { %v2872_v29 = vpop.f32.mrf.mxu0 }
 0x4bf   : > { %v1857_v31 = vadd.f32 %v2872_v29, %v1724_v27 }
 0x4c0   : > { %v1851_v32 = vpop.f32.mrf.mxu0 }
 0x4c1   : > { %v1852_v33 = vadd.f32 %v1851_v32, %v1724_v27  ;;  %v1931_v36 = vmax.f32 %v1857_v31, 0.0 }
 0x4c2   : > { %v2875_v34 = vpop.f32.mrf.mxu0 }
 0x4c3   : > { %v1930_v35 = vmax.f32 %v1852_v33, 0.0  ;;  %v1867_v37 = vadd.f32 %v2875_v34, %v1724_v27 }
 0x4c4   : > { %v1861_v38 = vpop.f32.mrf.mxu0 }
 0x4c5   : > { %v1862_v39 = vadd.f32 %v1861_v38, %v1724_v27  ;;  %2902 = vmatprep.mubr.msk.f32.mxu1 %vm592_vm2, %v1930_v35  ;;  %v1933_v47 = vmax.f32 %v1867_v37, 0.0 }
 0x4c6   : > { %v2878_v40 = vpop.f32.mrf.mxu0  ;;  %2903 = vmatmul.mubr.msk.f32.vlgmr.msra.gmra.mxu1 %vm592_vm2, %v1931_v36 }
 0x4c7   : > { %v1932_v41 = vmax.f32 %v1862_v39, 0.0  ;;  %v1877_v42 = vadd.f32 %v2878_v40, %v1724_v27 }
 0x4c8   : > { %v1871_v55 = vpop.f32.mrf.mxu0 }
 0x4c9   : > { %v1872_v30 = vadd.f32 %v1871_v55, %v1724_v27  ;;  %2905 = vmatprep.mubr.msk.f32.mxu1 %vm592_vm2, %v1932_v41  ;;  %v1935_v45 = vmax.f32 %v1877_v42, 0.0 }
 0x4ca   : > { %v2881_v43 = vpop.f32.mrf.mxu0  ;;  %2906 = vmatmul.mubr.msk.f32.gmra.mxu1 %vm592_vm2, %v1933_v47 }
 0x4cb   : > { %v1934_v44 = vmax.f32 %v1872_v30, 0.0  ;;  %v1887_v46 = vadd.f32 %v2881_v43, %v1724_v27 }
 0x4cc   : > { %v1881_v48 = vpop.f32.mrf.mxu0 }
 0x4cd   : > { %v1882_v49 = vadd.f32 %v1881_v48, %v1724_v27  ;;  %2908 = vmatprep.mubr.msk.f32.mxu1 %vm592_vm2, %v1934_v44  ;;  %v1937_v19 = vmax.f32 %v1887_v46, 0.0 }
 0x4ce   : > { %2909 = vmatmul.mubr.msk.f32.gmra.mxu1 %vm592_vm2, %v1935_v45 }
 0x4cf   : > { %v1936_v51 = vmax.f32 %v1882_v49, 0.0  ;;  %v2884_v18 = vpop.f32.mrf.mxu0 }
 0x4d0   : > { %v1897_v52 = vadd.f32 %v2884_v18, %v1724_v27 }
 0x4d1   : > { %v1891_v20 = vpop.f32.mrf.mxu0  ;;  %2911 = vmatprep.mubr.msk.f32.mxu1 %vm592_vm2, %v1936_v51 }
 0x4d2   : > { %v1892_v21 = vadd.f32 %v1891_v20, %v1724_v27  ;;  %2912 = vmatmul.mubr.msk.f32.gmra.mxu1 %vm592_vm2, %v1937_v19  ;;  %v1939_v54 = vmax.f32 %v1897_v52, 0.0 }
 0x4d3   : > { %v2887_v53 = vpop.f32.mrf.mxu0 }
 0x4d4   : > { %v1938_v50 = vmax.f32 %v1892_v21, 0.0  ;;  %v1907_v56 = vadd.f32 %v2887_v53, %v1724_v27 }
 0x4d5   : > { %v1901_v58 = vpop.f32.mrf.mxu0 }
 0x4d6   : > { %v1902_v59 = vadd.f32 %v1901_v58, %v1724_v27  ;;  %2914 = vmatprep.mubr.msk.f32.mxu1 %vm592_vm2, %v1938_v50  ;;  %v1941_v61 = vmax.f32 %v1907_v56, 0.0 }
 0x4d7   : > { %v2890_v60 = vpop.f32.mrf.mxu0  ;;  %2915 = vmatmul.mubr.msk.f32.gmra.mxu1 %vm592_vm2, %v1939_v54 }
 0x4d8   : > { %v1940_v57 = vmax.f32 %v1902_v59, 0.0  ;;  %v1917_v62 = vadd.f32 %v2890_v60, %v1724_v27 }
 0x4d9   : > { %v1911_v63 = vpop.f32.mrf.mxu0 }
 0x4da   : > { %v1912_v0 = vadd.f32 %v1911_v63, %v1724_v27  ;;  %2917 = vmatprep.mubr.msk.f32.mxu1 %vm592_vm2, %v1940_v57  ;;  %v1943_v3 = vmax.f32 %v1917_v62, 0.0 }
 0x4db   : > { %v2893_v1 = vpop.f32.mrf.mxu0  ;;  %2918 = vmatmul.mubr.msk.f32.gmra.mxu1 %vm592_vm2, %v1941_v61 }
 0x4dc   : > { %v1942_v2 = vmax.f32 %v1912_v0, 0.0  ;;  %v1927_v4 = vadd.f32 %v2893_v1, %v1724_v27 }
 0x4dd   : > { %v1921_v5 = vpop.f32.mrf.mxu0 }
 0x4de   : > { %v1922_v6 = vadd.f32 %v1921_v5, %v1724_v27  ;;  %2920 = vmatprep.mubr.msk.f32.mxu1 %vm592_vm2, %v1942_v2  ;;  %v1945_v8 = vmax.f32 %v1927_v4, 0.0 }
 0x4df   : > { %2921 = vmatmul.mubr.msk.f32.gmra.mxu1 %vm592_vm2, %v1943_v3 }
 0x4e0   : > { %v1944_v7 = vmax.f32 %v1922_v6, 0.0 }
 0x4e2   : > { %2923 = vmatprep.mubr.msk.f32.mxu1 %vm592_vm2, %v1944_v7 }
 0x4e3   : > { %2924 = vmatmul.mubr.msk.f32.gmra.mxu1 %vm592_vm2, %v1945_v8 }
 0x586   : > { %v2904_v12 = vpop.f32.mrf.mxu1 }
 0x587   : > { %v2070_v13 = vadd.f32 %v2904_v12, %v1949_v11 }
 0x588   : > { %v2064_v14 = vpop.f32.mrf.mxu1 }
 0x589   : > { %v2065_v15 = vadd.f32 %v2064_v14, %v1949_v11  ;;  %2145 = vmax.xlane.f32.xlu1 %v2070_v13 }
 0x58a   : > { %v2907_v16 = vpop.f32.mrf.mxu1 }
 0x58b   : > { %2143 = vmax.xlane.f32.xlu0 %v2065_v15  ;;  %v2080_v22 = vadd.f32 %v2907_v16, %v1949_v11 }
 0x58c   : > { %v2074_v17 = vpop.f32.mrf.mxu1 }
 0x58d   : > { %v2075_v25 = vadd.f32 %v2074_v17, %v1949_v11 }
 0x58e   : > { %v2910_v23 = vpop.f32.mrf.mxu1 }
 0x58f   : > { %2149 = vmax.xlane.f32.xlu0 %v2080_v22  ;;  %v2090_v29 = vadd.f32 %v2910_v23, %v1949_v11 }
 0x590   : > { %v2084_v24 = vpop.f32.mrf.mxu1 }
 0x591   : > { %v2085_v26 = vadd.f32 %v2084_v24, %v1949_v11 }
 0x592   : > { %v2913_v28 = vpop.f32.mrf.mxu1 }
 0x593   : > { %2151 = vmax.xlane.f32.xlu1 %v2085_v26  ;;  %2147 = vmax.xlane.f32.xlu0 %v2075_v25  ;;  %v2100_v33 = vadd.f32 %v2913_v28, %v1949_v11 }
 0x594   : > { %v2094_v27 = vpop.f32.mrf.mxu1 }
 0x595   : > { %v2095_v31 = vadd.f32 %v2094_v27, %v1949_v11 }
 0x597   : > { %v2916_v32 = vpop.f32.mrf.mxu1  ;;  %2155 = vmax.xlane.f32.xlu1 %v2095_v31  ;;  %2153 = vmax.xlane.f32.xlu0 %v2090_v29 }
 0x598   : > { %v3433_v37 = vadd.f32 %v2916_v32, %v1949_v11 }
 0x599   : > { %v2104_v34 = vpop.f32.mrf.mxu1 }
 0x59a   : > { %v3430_v35 = vadd.f32 %v2104_v34, %v1949_v11 }
 0x59b   : > { %v2919_v36 = vpop.f32.mrf.mxu1  ;;  %2157 = vmax.xlane.f32.xlu0 %v2100_v33 }
 0x59c   : > { %2159 = vmax.xlane.f32.xlu1 %v3430_v35  ;;  %v3439_v41 = vadd.f32 %v2919_v36, %v1949_v11 }
 0x59d   : > { %v2114_v38 = vpop.f32.mrf.mxu1 }
 0x59e   : > { %v3435_v39 = vadd.f32 %v2114_v38, %v1949_v11 }
 0x59f   : > { %v2922_v40 = vpop.f32.mrf.mxu1  ;;  %2161 = vmax.xlane.f32.xlu0 %v3433_v37 }
 0x5a0   : > { %2163 = vmax.xlane.f32.xlu1 %v3435_v39  ;;  %v3445_v30 = vadd.f32 %v2922_v40, %v1949_v11 }
 0x5a1   : > { %v2124_v47 = vpop.f32.mrf.mxu1 }
 0x5a2   : > { %v3441_v42 = vadd.f32 %v2124_v47, %v1949_v11 }
 0x5a3   : > { %v2925_v55 = vpop.f32.mrf.mxu1  ;;  %2165 = vmax.xlane.f32.xlu0 %v3439_v41 }
 0x5a4   : > { %2167 = vmax.xlane.f32.xlu1 %v3441_v42  ;;  %v3451_v45 = vadd.f32 %v2925_v55, %v1949_v11 }
 0x5a5   : > { %v2134_v43 = vpop.f32.mrf.mxu1 }
 0x5a6   : > { %v3447_v44 = vadd.f32 %v2134_v43, %v1949_v11 }
 0x5a7   : > { %2169 = vmax.xlane.f32.xlu0 %v3445_v30 }
 0x5a8   : > { %2171 = vmax.xlane.f32.xlu1 %v3447_v44 }
 0x5ab   : > { %2173 = vmax.xlane.f32.xlu0 %v3451_v45 }
 0x612   : > { %v2146_v46 = vpop.xlane.xlu1 %2145 }
 0x613   : > { %v2176_v48 = vsub.f32 %v2070_v13, %v2146_v46 }
 0x614   : > { %v2144_v49 = vpop.xlane.xlu0 %2143 }
 0x615   : > { %v2193_v51 = vmul.f32 1.442695, %v2176_v48  ;;  %v2175_v18 = vsub.f32 %v2065_v15, %v2144_v49 }
 0x617   : > { %2936 = vpow2.f32 %v2193_v51  ;;  %v2191_v19 = vmul.f32 1.442695, %v2175_v18 }
 0x618   : > { %v2150_v52 = vpop.xlane.xlu0 %2149 }
 0x619   : > { %2938 = vpow2.f32 %v2191_v19  ;;  %v2178_v20 = vsub.f32 %v2080_v22, %v2150_v52 }
 0x61b   : > { %v2197_v21 = vmul.f32 1.442695, %v2178_v20 }
 0x61c   : > { %v2152_v53 = vpop.xlane.xlu1 %2151  ;;  %v2148_v50 = vpop.xlane.xlu0 %2147 }
 0x61d   : > { %2940 = vpow2.f32 %v2197_v21  ;;  %v2179_v54 = vsub.f32 %v2085_v26, %v2152_v53  ;;  %v2177_v56 = vsub.f32 %v2075_v25, %v2148_v50 }
 0x61f   : > { %v2195_v58 = vmul.f32 1.442695, %v2177_v56  ;;  %v2199_v57 = vmul.f32 1.442695, %v2179_v54 }
 0x620   : > { %v2156_v59 = vpop.xlane.xlu1 %2155  ;;  %v2154_v60 = vpop.xlane.xlu0 %2153 }
 0x621   : > { %v2180_v61 = vsub.f32 %v2090_v29, %v2154_v60  ;;  %2942 = vpow2.f32 %v2195_v58  ;;  %v2181_v62 = vsub.f32 %v2095_v31, %v2156_v59 }
 0x622   : > { %2944 = vpow2.f32 %v2199_v57 }
 0x623   : > { %v2201_v63 = vmul.f32 1.442695, %v2180_v61  ;;  %v2203_v5 = vmul.f32 1.442695, %v2181_v62 }
 0x624   : > { %v3454_v0 = vpop.eup %2936  ;;  %v2158_v1 = vpop.xlane.xlu0 %2157 }
 0x625   : > { %v2160_v2 = vpop.xlane.xlu1 %2159  ;;  %v2182_v3 = vsub.f32 %v2100_v33, %v2158_v1  ;;  %2225 = vadd.xlane.f32.xlu0 %v3454_v0  ;;  %2946 = vpow2.f32 %v2201_v63 }
 0x626   : > { %v3457_v4 = vpop.eup %2938  ;;  %v2183_v6 = vsub.f32 %v3430_v35, %v2160_v2 }
 0x627   : > { %v2205_v7 = vmul.f32 1.442695, %v2182_v3  ;;  %2223 = vadd.xlane.f32.xlu1 %v3457_v4 }
 0x628   : > { %v2162_v8 = vpop.xlane.xlu0 %2161  ;;  %v2207_v12 = vmul.f32 1.442695, %v2183_v6 }
 0x629   : > { %2948 = vpow2.f32 %v2205_v7  ;;  %v2164_v9 = vpop.xlane.xlu1 %2163  ;;  %v2184_v10 = vsub.f32 %v3433_v37, %v2162_v8 }
 0x62a   : > { %v3462_v11 = vpop.eup %2940  ;;  %2950 = vpow2.f32 %v2203_v5  ;;  %v2185_v13 = vsub.f32 %v3435_v39, %v2164_v9 }
 0x62b   : > { %v2209_v14 = vmul.f32 1.442695, %v2184_v10  ;;  %2229 = vadd.xlane.f32.xlu0 %v3462_v11 }
 0x62c   : > { %v2166_v15 = vpop.xlane.xlu0 %2165  ;;  %v2211_v22 = vmul.f32 1.442695, %v2185_v13 }
 0x62d   : > { %2952 = vpow2.f32 %v2209_v14  ;;  %v2168_v16 = vpop.xlane.xlu1 %2167  ;;  %v2186_v17 = vsub.f32 %v3439_v41, %v2166_v15 }
 0x62e   : > { %2954 = vpow2.f32 %v2207_v12  ;;  %v2187_v23 = vsub.f32 %v3441_v42, %v2168_v16  ;;  %v3468_v24 = vpop.eup %2942 }
 0x62f   : > { %v2213_v25 = vmul.f32 1.442695, %v2186_v17  ;;  %2227 = vadd.xlane.f32.xlu1 %v3468_v24  ;;  %v3472_v29 = vpop.eup %2944 }
 0x630   : > { %v2170_v26 = vpop.xlane.xlu0 %2169  ;;  %v2215_v31 = vmul.f32 1.442695, %v2187_v23 }
 0x631   : > { %2956 = vpow2.f32 %v2213_v25  ;;  %v2188_v28 = vsub.f32 %v3445_v30, %v2170_v26  ;;  %v2172_v27 = vpop.xlane.xlu1 %2171 }
 0x632   : > { %2958 = vpow2.f32 %v2211_v22  ;;  %v2189_v32 = vsub.f32 %v3447_v44, %v2172_v27  ;;  %v3475_v33 = vpop.eup %2946 }
 0x633   : > { %v2217_v34 = vmul.f32 1.442695, %v2188_v28  ;;  %2233 = vadd.xlane.f32.xlu0 %v3475_v33  ;;  %2231 = vadd.xlane.f32.xlu1 %v3472_v29 }
 0x634   : > { %v2174_v35 = vpop.xlane.xlu0 %2173  ;;  %v2219_v38 = vmul.f32 1.442695, %v2189_v32 }
 0x635   : > { %2960 = vpow2.f32 %v2217_v34  ;;  %v2190_v36 = vsub.f32 %v3451_v45, %v2174_v35 }
 0x636   : > { %v3480_v37 = vpop.eup %2948  ;;  %2962 = vpow2.f32 %v2215_v31 }
 0x637   : > { %v3482_v39 = vpop.eup %2950  ;;  %v2221_v40 = vmul.f32 1.442695, %v2190_v36  ;;  %2237 = vadd.xlane.f32.xlu0 %v3480_v37 }
 0x638   : > { %2235 = vadd.xlane.f32.xlu1 %v3482_v39 }
 0x639   : > { %2964 = vpow2.f32 %v2221_v40 }
 0x63a   : > { %v3486_v41 = vpop.eup %2952  ;;  %2966 = vpow2.f32 %v2219_v38 }
 0x63b   : > { %v3488_v47 = vpop.eup %2954  ;;  %2241 = vadd.xlane.f32.xlu0 %v3486_v41 }
 0x63c   : > { %2239 = vadd.xlane.f32.xlu1 %v3488_v47 }
 0x63e   : > { %v3492_v42 = vpop.eup %2956 }
 0x63f   : > { %v3494_v55 = vpop.eup %2958  ;;  %2245 = vadd.xlane.f32.xlu0 %v3492_v42 }
 0x640   : > { %2243 = vadd.xlane.f32.xlu1 %v3494_v55 }
 0x642   : > { %v3498_v30 = vpop.eup %2960 }
 0x643   : > { %v3500_v43 = vpop.eup %2962  ;;  %2249 = vadd.xlane.f32.xlu0 %v3498_v30 }
 0x644   : > { %2247 = vadd.xlane.f32.xlu1 %v3500_v43 }
 0x646   : > { %v3504_v44 = vpop.eup %2964 }
 0x647   : > { %v3506_v45 = vpop.eup %2966  ;;  %2253 = vadd.xlane.f32.xlu0 %v3504_v44 }
 0x648   : > { %2251 = vadd.xlane.f32.xlu1 %v3506_v45 }
 0x6ae   : > { %v2226_v46 = vpop.xlane.xlu0 %2225 }
 0x6af   : > { %2968 = vrcp.f32 %v2226_v46 }
 0x6b0   : > { %v2224_v48 = vpop.xlane.xlu1 %2223 }
 0x6b1   : > { %2970 = vrcp.f32 %v2224_v48 }
 0x6b4   : > { %v2230_v49 = vpop.xlane.xlu0 %2229 }
 0x6b5   : > { %2972 = vrcp.f32 %v2230_v49 }
 0x6b8   : > { %v2228_v51 = vpop.xlane.xlu1 %2227 }
 0x6b9   : > { %2974 = vrcp.f32 %v2228_v51 }
 0x6bc   : > { %v2969_v18 = vpop.eup %2968  ;;  %v2234_v52 = vpop.xlane.xlu0 %2233 }
 0x6bd   : > { %v2258_v19 = vmul.f32 %v2969_v18, %v3454_v0  ;;  %v2232_v20 = vpop.xlane.xlu1 %2231  ;;  %2976 = vrcp.f32 %v2234_v52 }
 0x6be   : > { %v2971_v21 = vpop.eup %2970  ;;  %2978 = vrcp.f32 %v2232_v20 }
 0x6bf   : > { %2288 = vst [vmem:[%s3514_s30 + $0x8] sm:$0xff] %v2258_v19  ;;  %v2256_v53 = vmul.f32 %v2971_v21, %v3457_v4 }
 0x6c0   : > { %v2238_v50 = vpop.xlane.xlu0 %2237 }
 0x6c1   : > { %2287 = vst [vmem:[%s3514_s30] sm:$0xff] %v2256_v53  ;;  %v2236_v54 = vpop.xlane.xlu1 %2235  ;;  %2980 = vrcp.f32 %v2238_v50 }
 0x6c2   : > { %v2973_v56 = vpop.eup %2972  ;;  %2982 = vrcp.f32 %v2236_v54 }
 0x6c3   : > { %v2262_v58 = vmul.f32 %v2973_v56, %v3462_v11 }
 0x6c4   : > { %v2242_v59 = vpop.xlane.xlu0 %2241 }
 0x6c5   : > { %2290 = vst [vmem:[%s3514_s30 + $0x18] sm:$0xff] %v2262_v58  ;;  %v2240_v60 = vpop.xlane.xlu1 %2239  ;;  %2984 = vrcp.f32 %v2242_v59 }
 0x6c6   : > { %v2975_v57 = vpop.eup %2974  ;;  %2986 = vrcp.f32 %v2240_v60 }
 0x6c7   : > { %v2260_v61 = vmul.f32 %v2975_v57, %v3468_v24 }
 0x6c8   : > { %v2246_v62 = vpop.xlane.xlu0 %2245 }
 0x6c9   : > { %v2244_v63 = vpop.xlane.xlu1 %2243  ;;  %2289 = vst [vmem:[%s3514_s30 + $0x10] sm:$0xff] %v2260_v61  ;;  %2988 = vrcp.f32 %v2246_v62 }
 0x6ca   : > { %v2977_v0 = vpop.eup %2976  ;;  %2990 = vrcp.f32 %v2244_v63 }
 0x6cb   : > { %v2979_v1 = vpop.eup %2978  ;;  %v2266_v2 = vmul.f32 %v2977_v0, %v3475_v33 }
 0x6cc   : > { %v2264_v3 = vmul.f32 %v2979_v1, %v3472_v29  ;;  %v2250_v4 = vpop.xlane.xlu0 %2249 }
 0x6cd   : > { %v2248_v5 = vpop.xlane.xlu1 %2247  ;;  %2292 = vst [vmem:[%s3514_s30 + $0x28] sm:$0xff] %v2266_v2  ;;  %2992 = vrcp.f32 %v2250_v4 }
 0x6ce   : > { %v2981_v6 = vpop.eup %2980  ;;  %2291 = vst [vmem:[%s3514_s30 + $0x20] sm:$0xff] %v2264_v3  ;;  %2994 = vrcp.f32 %v2248_v5 }
 0x6cf   : > { %v2983_v7 = vpop.eup %2982  ;;  %v2270_v8 = vmul.f32 %v2981_v6, %v3480_v37 }
 0x6d0   : > { %v2268_v9 = vmul.f32 %v2983_v7, %v3482_v39  ;;  %v2254_v10 = vpop.xlane.xlu0 %2253 }
 0x6d1   : > { %v2252_v11 = vpop.xlane.xlu1 %2251  ;;  %2294 = vst [vmem:[%s3514_s30 + $0x38] sm:$0xff] %v2270_v8  ;;  %2996 = vrcp.f32 %v2254_v10 }
 0x6d2   : > { %v2985_v12 = vpop.eup %2984  ;;  %2293 = vst [vmem:[%s3514_s30 + $0x30] sm:$0xff] %v2268_v9  ;;  %2998 = vrcp.f32 %v2252_v11 }
 0x6d3   : > { %v2987_v13 = vpop.eup %2986  ;;  %v2274_v14 = vmul.f32 %v2985_v12, %v3486_v41 }
 0x6d4   : > { %v2272_v15 = vmul.f32 %v2987_v13, %v3488_v47 }
 0x6d5   : > { %2296 = vst [vmem:[%s3514_s30 + $0x48] sm:$0xff] %v2274_v14 }
 0x6d6   : > { %v2989_v16 = vpop.eup %2988  ;;  %2295 = vst [vmem:[%s3514_s30 + $0x40] sm:$0xff] %v2272_v15 }
 0x6d7   : > { %v2991_v17 = vpop.eup %2990  ;;  %v2278_v22 = vmul.f32 %v2989_v16, %v3492_v42 }
 0x6d8   : > { %v2276_v23 = vmul.f32 %v2991_v17, %v3494_v55 }
 0x6d9   : > { %2298 = vst [vmem:[%s3514_s30 + $0x58] sm:$0xff] %v2278_v22 }
 0x6da   : > { %v2993_v24 = vpop.eup %2992  ;;  %2297 = vst [vmem:[%s3514_s30 + $0x50] sm:$0xff] %v2276_v23 }
 0x6db   : > { %v2995_v25 = vpop.eup %2994  ;;  %v2282_v26 = vmul.f32 %v2993_v24, %v3498_v30 }
 0x6dc   : > { %v2280_v28 = vmul.f32 %v2995_v25, %v3500_v43 }
 0x6dd   : > { %2300 = vst [vmem:[%s3514_s30 + $0x68] sm:$0xff] %v2282_v26 }
 0x6de   : > { %v2997_v27 = vpop.eup %2996  ;;  %2299 = vst [vmem:[%s3514_s30 + $0x60] sm:$0xff] %v2280_v28 }
 0x6df   : > { %v2999_v29 = vpop.eup %2998  ;;  %v2286_v31 = vmul.f32 %v2997_v27, %v3504_v44 }
 0x6e0   : > { %v2284_v32 = vmul.f32 %v2999_v29, %v3506_v45 }
 0x6e1   : > { %2302 = vst [vmem:[%s3514_s30 + $0x78] sm:$0xff] %v2286_v31 }
 0x6e2   : > { %2301 = vst [vmem:[%s3514_s30 + $0x70] sm:$0xff] %v2284_v32 }
 0x6e3 PF: > { %s18_s27 = sadd.s32 1, %s3007_s27  }
 0x6e4   : > { %p15_p4 = scmp.ge.s32.totalorder %s18_s27, 4  }
 0x6e6   :  { %17 = sbr.rel (!%p15_p4) target bundleno = 1 (0x1), region = 85 }

</bundles_post_ra>
